<compile_context>
chip_gen: v7x
topology: tpu7x:2x2x1
jax: 0.10.0
libtpu: 0.0.40
codegen_flags: <defaults>
</compile_context>

<pallas_src>
import numpy as np
import jax
import jax.numpy as jnp
from jax import lax
from jax.experimental import pallas as pl
from jax.experimental.pallas import tpu as pltpu


# ---------------------------------------------------------------------------
# BN folding / parameter preparation (inference semantics of nn.BatchNorm2d)
# ---------------------------------------------------------------------------
def fold_bn(gamma, beta, mean, var, eps=1e-5):
    scale = gamma / jnp.sqrt(var + eps)
    shift = beta - mean * scale
    return scale.astype(jnp.float32), shift.astype(jnp.float32)


def prepare_pallas_params(w1, s1, t1, w2, s2, t2, w3, s3, t3):
    """Fold BN scale into conv weights; keep shift as bias; channel-major layout.

    w1: (Cout, Cin)        1x1 conv weight (PyTorch layout, squeezed)
    w2, w3: (Cout, Cin, 3, 3)  3x3 conv weights (PyTorch OIHW)
    """
    C = w1.shape[0]
    w1_cm = (w1 * s1[:, None]).astype(jnp.float32)                        # (Cout, Cin)
    w2_cm = (jnp.transpose(w2, (2, 3, 0, 1))
             * s2[None, None, :, None]).astype(jnp.float32)               # (ky,kx,Cout,Cin)
    w3_cm = (jnp.transpose(w3, (2, 3, 0, 1))
             * s3[None, None, :, None]).astype(jnp.float32)
    return dict(w1=w1_cm, w2=w2_cm, w3=w3_cm,
                b1=t1.reshape(C, 1), b2=t2.reshape(C, 1), b3=t3.reshape(C, 1))


# ---------------------------------------------------------------------------
# Fused UpConv forward (single pallas_call, one grid step per batch element)
# ---------------------------------------------------------------------------
def upconv_forward(x_nchw, p, scale_factor):
    N, C, Hs, Ws = x_nchw.shape
    Hu, Wu = Hs * scale_factor, Ws * scale_factor
    S_in, S_out = Hs * Ws, Hu * Wu
    PAD = Wu + 1                       # flat halo = one pad row + one extra element
    L = S_out + 2 * PAD                # flat padded length

    # NCHW kept as-is; flattening HxW is a free contiguous reshape (no transpose).
    x = x_nchw.reshape(N, C, S_in)

    # Constant 0/1 nearest-upsample replication matrix: y_up = y1 @ U (lane-dense).
    dst = np.arange(S_out)
    src = (dst // Wu // scale_factor) * Ws + (dst % Wu) // scale_factor
    U = jnp.asarray((np.arange(S_in)[:, None] == src[None, :]).astype(np.float32))

    # Column masks killing the row-boundary bleed of the dx = -1 / +1 taps.
    col = np.arange(S_out) % Wu
    m_left = jnp.asarray((col > 0).astype(np.float32).reshape(1, S_out))
    m_right = jnp.asarray((col < Wu - 1).astype(np.float32).reshape(1, S_out))

    def kernel(x_ref, u_ref, ml_ref, mr_ref, w1_ref, w2_ref, w3_ref,
               b1_ref, b2_ref, b3_ref, o_ref, pad_ref):
        # Zero only the halo; the interior is fully rewritten below.  Done every
        # step (2 tiny stores) instead of pl.when(program_id==0) so it stays
        # correct when the batch axis is sharded across TensorCores.
        halo = jnp.zeros((C, PAD), jnp.float32)
        pad_ref[:, pl.ds(0, PAD)] = halo
        pad_ref[:, pl.ds(PAD + S_out, PAD)] = halo

        m_l = ml_ref[...]              # (1, S_out)
        m_r = mr_ref[...]

        # fuse_layers: 1x1 conv (BN scale folded) + BN shift, channel-major.
        y1 = jnp.dot(w1_ref[...], x_ref[0],
                     preferred_element_type=jnp.float32) + b1_ref[...]    # (C, S_in)
        # nearest upsample as one small MXU matmul -> (C, S_out), lane-dense.
        y_up = jnp.dot(y1, u_ref[...], preferred_element_type=jnp.float32)

        def conv3x3_bn_relu(w_ref, b_ref):
            acc = None
            for dy in (-1, 0, 1):
                for dx in (-1, 0, 1):
                    start = PAD + dy * Wu + dx                # static per tap
                    patch = pad_ref[:, pl.ds(start, S_out)]   # (C, S_out) slice from ref
                    if dx == -1:
                        patch = patch * m_l
                    elif dx == 1:
                        patch = patch * m_r
                    t = jnp.dot(w_ref[dy + 1, dx + 1], patch,
                                preferred_element_type=jnp.float32)
                    acc = t if acc is None else acc + t       # init from first dot
            return jnp.maximum(acc + b_ref[...], 0.0)         # BN shift + ReLU

        pad_ref[:, pl.ds(PAD, S_out)] = y_up                  # interior of padded buf
        y2 = conv3x3_bn_relu(w2_ref, b2_ref)
        pad_ref[:, pl.ds(PAD, S_out)] = y2                    # reuse same buffer
        y3 = conv3x3_bn_relu(w3_ref, b3_ref)
        o_ref[0] = y3.astype(o_ref.dtype)                     # 256-lane dense store

    out = pl.pallas_call(
        kernel,
        out_shape=jax.ShapeDtypeStruct((N, C, S_out), x_nchw.dtype),
        grid=(N,),
        in_specs=[
            pl.BlockSpec((1, C, S_in), lambda n: (n, 0, 0)),
            pl.BlockSpec((S_in, S_out), lambda n: (0, 0)),
            pl.BlockSpec((1, S_out), lambda n: (0, 0)),
            pl.BlockSpec((1, S_out), lambda n: (0, 0)),
            pl.BlockSpec((C, C), lambda n: (0, 0)),
            pl.BlockSpec((3, 3, C, C), lambda n: (0, 0, 0, 0)),
            pl.BlockSpec((3, 3, C, C), lambda n: (0, 0, 0, 0)),
            pl.BlockSpec((C, 1), lambda n: (0, 0)),
            pl.BlockSpec((C, 1), lambda n: (0, 0)),
            pl.BlockSpec((C, 1), lambda n: (0, 0)),
        ],
        out_specs=pl.BlockSpec((1, C, S_out), lambda n: (n, 0, 0)),
        scratch_shapes=[pltpu.VMEM((C, L), jnp.float32)],
        compiler_params=pltpu.CompilerParams(
            dimension_semantics=("parallel",)),
    )(x, U, m_left, m_right, p["w1"], p["w2"], p["w3"],
      p["b1"], p["b2"], p["b3"])

    return out.reshape(N, C, Hu, Wu)                          # free reshape, stays NCHW


# ---------------------------------------------------------------------------
# Pure-JAX reference (for correctness check only)
# ---------------------------------------------------------------------------
def upconv_reference(x, w1, s1, t1, w2, s2, t2, w3, s3, t3, scale_factor):
    dn = ("NCHW", "OIHW", "NCHW")
    C = w1.shape[0]
    y = lax.conv_general_dilated(x, w1.reshape(C, C, 1, 1), (1, 1), "VALID",
                                 dimension_numbers=dn)
    y = y * s1[None, :, None, None] + t1[None, :, None, None]
    y = jnp.repeat(jnp.repeat(y, scale_factor, axis=2), scale_factor, axis=3)
    y = lax.conv_general_dilated(y, w2, (1, 1), "SAME", dimension_numbers=dn)
    y = jnp.maximum(y * s2[None, :, None, None] + t2[None, :, None, None], 0.0)
    y = lax.conv_general_dilated(y, w3, (1, 1), "SAME", dimension_numbers=dn)
    y = jnp.maximum(y * s3[None, :, None, None] + t3[None, :, None, None], 0.0)
    return y


if __name__ == "__main__":
    # cfg.MODEL.DIM_MODEL = 32, HEATMAP_SIZE = [16, 16], TRANS_SIZE = [8, 8]
    N, C = 2, 32
    trans_h, trans_w = 8, 8
    heatmap_h, heatmap_w = 16, 16
    scale_factor = heatmap_h // trans_w           # heatmap_size[0] // trans_size[1] = 2

    key = jax.random.PRNGKey(0)
    ks = jax.random.split(key, 8)

    x = jax.random.normal(ks[0], (N, C, trans_h, trans_w), jnp.float32)

    # Conv weights in PyTorch layouts (bias=False everywhere, as in the module).
    w1 = 0.1 * jax.random.normal(ks[1], (C, C), jnp.float32)            # (Cout, Cin)
    w2 = 0.05 * jax.random.normal(ks[2], (C, C, 3, 3), jnp.float32)     # OIHW
    w3 = 0.05 * jax.random.normal(ks[3], (C, C, 3, 3), jnp.float32)

    def bn_params(k):
        a, b, c, d = jax.random.split(k, 4)
        gamma = 1.0 + 0.1 * jax.random.normal(a, (C,), jnp.float32)
        beta = 0.1 * jax.random.normal(b, (C,), jnp.float32)
        mean = 0.1 * jax.random.normal(c, (C,), jnp.float32)
        var = 0.5 + jnp.abs(jax.random.normal(d, (C,), jnp.float32))
        return gamma, beta, mean, var

    g1, be1, m1, v1 = bn_params(ks[4])
    g2, be2, m2, v2 = bn_params(ks[5])
    g3, be3, m3, v3 = bn_params(ks[6])

    # TODO(synk): BatchNorm is implemented in eval/inference mode (folded from
    # running stats); training-mode batch statistics are not computed.
    s1, t1 = fold_bn(g1, be1, m1, v1)
    s2, t2 = fold_bn(g2, be2, m2, v2)
    s3, t3 = fold_bn(g3, be3, m3, v3)

    pparams = prepare_pallas_params(w1, s1, t1, w2, s2, t2, w3, s3, t3)

    fwd = jax.jit(lambda xx, pp: upconv_forward(xx, pp, scale_factor))
    out = jax.block_until_ready(fwd(x, pparams))
    assert out.shape == (N, C, heatmap_h, heatmap_w), out.shape

    ref = jax.block_until_ready(
        upconv_reference(x, w1, s1, t1, w2, s2, t2, w3, s3, t3, scale_factor))
    max_err = float(jnp.max(jnp.abs(out - ref)))
    assert jnp.allclose(out, ref, rtol=1e-4, atol=1e-4), max_err

    print("KERNEL_OK")
</pallas_src>

<mosaic_0001>
module attributes {stable_mosaic.version = 11 : i64} {
  func.func @kernel(%arg0: i32, %arg1: memref<1x32x64xf32, #tpu.memory_space<vmem>>, %arg2: memref<64x256xf32, #tpu.memory_space<vmem>>, %arg3: memref<1x256xf32, #tpu.memory_space<vmem>>, %arg4: memref<1x256xf32, #tpu.memory_space<vmem>>, %arg5: memref<32x32xf32, #tpu.memory_space<vmem>>, %arg6: memref<3x3x32x32xf32, #tpu.memory_space<vmem>>, %arg7: memref<3x3x32x32xf32, #tpu.memory_space<vmem>>, %arg8: memref<32x1xf32, #tpu.memory_space<vmem>>, %arg9: memref<32x1xf32, #tpu.memory_space<vmem>>, %arg10: memref<32x1xf32, #tpu.memory_space<vmem>>, %arg11: memref<1x32x256xf32, #tpu.memory_space<vmem>>, %arg12: memref<32x290xf32, #tpu.memory_space<vmem>>) attributes {dimension_semantics = [#tpu.dimension_semantics<parallel>], iteration_bounds = array<i64: 2>, scalar_prefetch = 0 : i64, scratch_operands = 1 : i64, tpu.core_type = #tpu.core_type<tc>, window_params = [{transform_indices = @transform_0, window_bounds = array<i64: 1, 32, 64>}, {pipeline_mode = #tpu.pipeline_mode<synchronous>, transform_indices = @transform_1, window_bounds = array<i64: 64, 256>}, {pipeline_mode = #tpu.pipeline_mode<synchronous>, transform_indices = @transform_2, window_bounds = array<i64: 1, 256>}, {pipeline_mode = #tpu.pipeline_mode<synchronous>, transform_indices = @transform_3, window_bounds = array<i64: 1, 256>}, {pipeline_mode = #tpu.pipeline_mode<synchronous>, transform_indices = @transform_4, window_bounds = array<i64: 32, 32>}, {pipeline_mode = #tpu.pipeline_mode<synchronous>, transform_indices = @transform_5, window_bounds = array<i64: 3, 3, 32, 32>}, {pipeline_mode = #tpu.pipeline_mode<synchronous>, transform_indices = @transform_6, window_bounds = array<i64: 3, 3, 32, 32>}, {pipeline_mode = #tpu.pipeline_mode<synchronous>, transform_indices = @transform_7, window_bounds = array<i64: 32, 1>}, {pipeline_mode = #tpu.pipeline_mode<synchronous>, transform_indices = @transform_8, window_bounds = array<i64: 32, 1>}, {pipeline_mode = #tpu.pipeline_mode<synchronous>, transform_indices = @transform_9, window_bounds = array<i64: 32, 1>}, {transform_indices = @transform_10, window_bounds = array<i64: 1, 32, 256>}]} {
    %cst = arith.constant 0.000000e+00 : f32
    %0 = vector.broadcast %cst : f32 to vector<32x17xf32>
    %c0 = arith.constant 0 : index
    %c0_0 = arith.constant 0 : index
    %1 = vector.load %arg12[%c0, %c0_0] : memref<32x290xf32, #tpu.memory_space<vmem>>, vector<32x17xf32>
    tpu.vector_store %arg12[%c0, %c0_0], %0 {strides = array<i32>} : memref<32x290xf32, #tpu.memory_space<vmem>>, vector<32x17xf32>,
    %c0_1 = arith.constant 0 : index
    %c273 = arith.constant 273 : index
    %2 = vector.load %arg12[%c0_1, %c273] : memref<32x290xf32, #tpu.memory_space<vmem>>, vector<32x17xf32>
    tpu.vector_store %arg12[%c0_1, %c273], %0 {strides = array<i32>} : memref<32x290xf32, #tpu.memory_space<vmem>>, vector<32x17xf32>,
    %c0_2 = arith.constant 0 : index
    %c0_3 = arith.constant 0 : index
    %3 = vector.load %arg3[%c0_2, %c0_3] : memref<1x256xf32, #tpu.memory_space<vmem>>, vector<1x256xf32>
    %c0_4 = arith.constant 0 : index
    %c0_5 = arith.constant 0 : index
    %4 = vector.load %arg4[%c0_4, %c0_5] : memref<1x256xf32, #tpu.memory_space<vmem>>, vector<1x256xf32>
    %c0_6 = arith.constant 0 : index
    %c0_7 = arith.constant 0 : index
    %5 = vector.load %arg5[%c0_6, %c0_7] : memref<32x32xf32, #tpu.memory_space<vmem>>, vector<32x32xf32>
    %c0_8 = arith.constant 0 : index
    %c0_9 = arith.constant 0 : index
    %c0_10 = arith.constant 0 : index
    %6 = vector.load %arg1[%c0_8, %c0_9, %c0_10] : memref<1x32x64xf32, #tpu.memory_space<vmem>>, vector<1x32x64xf32>
    %7 = vector.shape_cast %6 : vector<1x32x64xf32> to vector<32x64xf32>
    %cst_11 = arith.constant dense<0.000000e+00> : vector<32x64xf32>
    %8 = tpu.matmul %5, %7, %cst_11 {dimension_numbers = #tpu.dot_dimension_numbers<[1], [0], [0], [1], [0, 0, 1, 1], [], []>} : vector<32x32xf32>, vector<32x64xf32>, vector<32x64xf32> -> vector<32x64xf32>
    %c0_12 = arith.constant 0 : index
    %c0_13 = arith.constant 0 : index
    %9 = vector.load %arg8[%c0_12, %c0_13] : memref<32x1xf32, #tpu.memory_space<vmem>>, vector<32x1xf32>
    %10 = vector.broadcast %9 : vector<32x1xf32> to vector<32x64xf32>
    %11 = arith.addf %8, %10 : vector<32x64xf32>
    %c0_14 = arith.constant 0 : index
    %c0_15 = arith.constant 0 : index
    %12 = vector.load %arg2[%c0_14, %c0_15] : memref<64x256xf32, #tpu.memory_space<vmem>>, vector<64x256xf32>
    %cst_16 = arith.constant dense<0.000000e+00> : vector<32x256xf32>
    %13 = tpu.matmul %11, %12, %cst_16 {dimension_numbers = #tpu.dot_dimension_numbers<[1], [0], [0], [1], [0, 0, 1, 1], [], []>} : vector<32x64xf32>, vector<64x256xf32>, vector<32x256xf32> -> vector<32x256xf32>
    %c0_17 = arith.constant 0 : index
    %c17 = arith.constant 17 : index
    %14 = vector.load %arg12[%c0_17, %c17] : memref<32x290xf32, #tpu.memory_space<vmem>>, vector<32x256xf32>
    tpu.vector_store %arg12[%c0_17, %c17], %13 {strides = array<i32>} : memref<32x290xf32, #tpu.memory_space<vmem>>, vector<32x256xf32>,
    %c0_18 = arith.constant 0 : index
    %c0_19 = arith.constant 0 : index
    %15 = vector.load %arg12[%c0_18, %c0_19] : memref<32x290xf32, #tpu.memory_space<vmem>>, vector<32x256xf32>
    %16 = vector.broadcast %3 : vector<1x256xf32> to vector<32x256xf32>
    %17 = arith.mulf %15, %16 : vector<32x256xf32>
    %c0_20 = arith.constant 0 : index
    %c0_21 = arith.constant 0 : index
    %c0_22 = arith.constant 0 : index
    %c0_23 = arith.constant 0 : index
    %18 = vector.load %arg6[%c0_20, %c0_21, %c0_22, %c0_23] : memref<3x3x32x32xf32, #tpu.memory_space<vmem>>, vector<1x1x32x32xf32>
    %19 = vector.shape_cast %18 : vector<1x1x32x32xf32> to vector<32x32xf32>
    %cst_24 = arith.constant dense<0.000000e+00> : vector<32x256xf32>
    %20 = tpu.matmul %19, %17, %cst_24 {dimension_numbers = #tpu.dot_dimension_numbers<[1], [0], [0], [1], [0, 0, 1, 1], [], []>} : vector<32x32xf32>, vector<32x256xf32>, vector<32x256xf32> -> vector<32x256xf32>
    %c0_25 = arith.constant 0 : index
    %c1 = arith.constant 1 : index
    %21 = vector.load %arg12[%c0_25, %c1] : memref<32x290xf32, #tpu.memory_space<vmem>>, vector<32x256xf32>
    %c0_26 = arith.constant 0 : index
    %c1_27 = arith.constant 1 : index
    %c0_28 = arith.constant 0 : index
    %c0_29 = arith.constant 0 : index
    %22 = vector.load %arg6[%c0_26, %c1_27, %c0_28, %c0_29] : memref<3x3x32x32xf32, #tpu.memory_space<vmem>>, vector<1x1x32x32xf32>
    %23 = vector.shape_cast %22 : vector<1x1x32x32xf32> to vector<32x32xf32>
    %cst_30 = arith.constant dense<0.000000e+00> : vector<32x256xf32>
    %24 = tpu.matmul %23, %21, %cst_30 {dimension_numbers = #tpu.dot_dimension_numbers<[1], [0], [0], [1], [0, 0, 1, 1], [], []>} : vector<32x32xf32>, vector<32x256xf32>, vector<32x256xf32> -> vector<32x256xf32>
    %25 = arith.addf %20, %24 : vector<32x256xf32>
    %c0_31 = arith.constant 0 : index
    %c2 = arith.constant 2 : index
    %26 = vector.load %arg12[%c0_31, %c2] : memref<32x290xf32, #tpu.memory_space<vmem>>, vector<32x256xf32>
    %27 = vector.broadcast %4 : vector<1x256xf32> to vector<32x256xf32>
    %28 = arith.mulf %26, %27 : vector<32x256xf32>
    %c0_32 = arith.constant 0 : index
    %c2_33 = arith.constant 2 : index
    %c0_34 = arith.constant 0 : index
    %c0_35 = arith.constant 0 : index
    %29 = vector.load %arg6[%c0_32, %c2_33, %c0_34, %c0_35] : memref<3x3x32x32xf32, #tpu.memory_space<vmem>>, vector<1x1x32x32xf32>
    %30 = vector.shape_cast %29 : vector<1x1x32x32xf32> to vector<32x32xf32>
    %cst_36 = arith.constant dense<0.000000e+00> : vector<32x256xf32>
    %31 = tpu.matmul %30, %28, %cst_36 {dimension_numbers = #tpu.dot_dimension_numbers<[1], [0], [0], [1], [0, 0, 1, 1], [], []>} : vector<32x32xf32>, vector<32x256xf32>, vector<32x256xf32> -> vector<32x256xf32>
    %32 = arith.addf %25, %31 : vector<32x256xf32>
    %c0_37 = arith.constant 0 : index
    %c16 = arith.constant 16 : index
    %33 = vector.load %arg12[%c0_37, %c16] : memref<32x290xf32, #tpu.memory_space<vmem>>, vector<32x256xf32>
    %34 = vector.broadcast %3 : vector<1x256xf32> to vector<32x256xf32>
    %35 = arith.mulf %33, %34 : vector<32x256xf32>
    %c1_38 = arith.constant 1 : index
    %c0_39 = arith.constant 0 : index
    %c0_40 = arith.constant 0 : index
    %c0_41 = arith.constant 0 : index
    %36 = vector.load %arg6[%c1_38, %c0_39, %c0_40, %c0_41] : memref<3x3x32x32xf32, #tpu.memory_space<vmem>>, vector<1x1x32x32xf32>
    %37 = vector.shape_cast %36 : vector<1x1x32x32xf32> to vector<32x32xf32>
    %cst_42 = arith.constant dense<0.000000e+00> : vector<32x256xf32>
    %38 = tpu.matmul %37, %35, %cst_42 {dimension_numbers = #tpu.dot_dimension_numbers<[1], [0], [0], [1], [0, 0, 1, 1], [], []>} : vector<32x32xf32>, vector<32x256xf32>, vector<32x256xf32> -> vector<32x256xf32>
    %39 = arith.addf %32, %38 : vector<32x256xf32>
    %c0_43 = arith.constant 0 : index
    %c17_44 = arith.constant 17 : index
    %40 = vector.load %arg12[%c0_43, %c17_44] : memref<32x290xf32, #tpu.memory_space<vmem>>, vector<32x256xf32>
    %c1_45 = arith.constant 1 : index
    %c1_46 = arith.constant 1 : index
    %c0_47 = arith.constant 0 : index
    %c0_48 = arith.constant 0 : index
    %41 = vector.load %arg6[%c1_45, %c1_46, %c0_47, %c0_48] : memref<3x3x32x32xf32, #tpu.memory_space<vmem>>, vector<1x1x32x32xf32>
    %42 = vector.shape_cast %41 : vector<1x1x32x32xf32> to vector<32x32xf32>
    %cst_49 = arith.constant dense<0.000000e+00> : vector<32x256xf32>
    %43 = tpu.matmul %42, %40, %cst_49 {dimension_numbers = #tpu.dot_dimension_numbers<[1], [0], [0], [1], [0, 0, 1, 1], [], []>} : vector<32x32xf32>, vector<32x256xf32>, vector<32x256xf32> -> vector<32x256xf32>
    %44 = arith.addf %39, %43 : vector<32x256xf32>
    %c0_50 = arith.constant 0 : index
    %c18 = arith.constant 18 : index
    %45 = vector.load %arg12[%c0_50, %c18] : memref<32x290xf32, #tpu.memory_space<vmem>>, vector<32x256xf32>
    %46 = vector.broadcast %4 : vector<1x256xf32> to vector<32x256xf32>
    %47 = arith.mulf %45, %46 : vector<32x256xf32>
    %c1_51 = arith.constant 1 : index
    %c2_52 = arith.constant 2 : index
    %c0_53 = arith.constant 0 : index
    %c0_54 = arith.constant 0 : index
    %48 = vector.load %arg6[%c1_51, %c2_52, %c0_53, %c0_54] : memref<3x3x32x32xf32, #tpu.memory_space<vmem>>, vector<1x1x32x32xf32>
    %49 = vector.shape_cast %48 : vector<1x1x32x32xf32> to vector<32x32xf32>
    %cst_55 = arith.constant dense<0.000000e+00> : vector<32x256xf32>
    %50 = tpu.matmul %49, %47, %cst_55 {dimension_numbers = #tpu.dot_dimension_numbers<[1], [0], [0], [1], [0, 0, 1, 1], [], []>} : vector<32x32xf32>, vector<32x256xf32>, vector<32x256xf32> -> vector<32x256xf32>
    %51 = arith.addf %44, %50 : vector<32x256xf32>
    %c0_56 = arith.constant 0 : index
    %c32 = arith.constant 32 : index
    %52 = vector.load %arg12[%c0_56, %c32] : memref<32x290xf32, #tpu.memory_space<vmem>>, vector<32x256xf32>
    %53 = vector.broadcast %3 : vector<1x256xf32> to vector<32x256xf32>
    %54 = arith.mulf %52, %53 : vector<32x256xf32>
    %c2_57 = arith.constant 2 : index
    %c0_58 = arith.constant 0 : index
    %c0_59 = arith.constant 0 : index
    %c0_60 = arith.constant 0 : index
    %55 = vector.load %arg6[%c2_57, %c0_58, %c0_59, %c0_60] : memref<3x3x32x32xf32, #tpu.memory_space<vmem>>, vector<1x1x32x32xf32>
    %56 = vector.shape_cast %55 : vector<1x1x32x32xf32> to vector<32x32xf32>
    %cst_61 = arith.constant dense<0.000000e+00> : vector<32x256xf32>
    %57 = tpu.matmul %56, %54, %cst_61 {dimension_numbers = #tpu.dot_dimension_numbers<[1], [0], [0], [1], [0, 0, 1, 1], [], []>} : vector<32x32xf32>, vector<32x256xf32>, vector<32x256xf32> -> vector<32x256xf32>
    %58 = arith.addf %51, %57 : vector<32x256xf32>
    %c0_62 = arith.constant 0 : index
    %c33 = arith.constant 33 : index
    %59 = vector.load %arg12[%c0_62, %c33] : memref<32x290xf32, #tpu.memory_space<vmem>>, vector<32x256xf32>
    %c2_63 = arith.constant 2 : index
    %c1_64 = arith.constant 1 : index
    %c0_65 = arith.constant 0 : index
    %c0_66 = arith.constant 0 : index
    %60 = vector.load %arg6[%c2_63, %c1_64, %c0_65, %c0_66] : memref<3x3x32x32xf32, #tpu.memory_space<vmem>>, vector<1x1x32x32xf32>
    %61 = vector.shape_cast %60 : vector<1x1x32x32xf32> to vector<32x32xf32>
    %cst_67 = arith.constant dense<0.000000e+00> : vector<32x256xf32>
    %62 = tpu.matmul %61, %59, %cst_67 {dimension_numbers = #tpu.dot_dimension_numbers<[1], [0], [0], [1], [0, 0, 1, 1], [], []>} : vector<32x32xf32>, vector<32x256xf32>, vector<32x256xf32> -> vector<32x256xf32>
    %63 = arith.addf %58, %62 : vector<32x256xf32>
    %c0_68 = arith.constant 0 : index
    %c34 = arith.constant 34 : index
    %64 = vector.load %arg12[%c0_68, %c34] : memref<32x290xf32, #tpu.memory_space<vmem>>, vector<32x256xf32>
    %65 = vector.broadcast %4 : vector<1x256xf32> to vector<32x256xf32>
    %66 = arith.mulf %64, %65 : vector<32x256xf32>
    %c2_69 = arith.constant 2 : index
    %c2_70 = arith.constant 2 : index
    %c0_71 = arith.constant 0 : index
    %c0_72 = arith.constant 0 : index
    %67 = vector.load %arg6[%c2_69, %c2_70, %c0_71, %c0_72] : memref<3x3x32x32xf32, #tpu.memory_space<vmem>>, vector<1x1x32x32xf32>
    %68 = vector.shape_cast %67 : vector<1x1x32x32xf32> to vector<32x32xf32>
    %cst_73 = arith.constant dense<0.000000e+00> : vector<32x256xf32>
    %69 = tpu.matmul %68, %66, %cst_73 {dimension_numbers = #tpu.dot_dimension_numbers<[1], [0], [0], [1], [0, 0, 1, 1], [], []>} : vector<32x32xf32>, vector<32x256xf32>, vector<32x256xf32> -> vector<32x256xf32>
    %70 = arith.addf %63, %69 : vector<32x256xf32>
    %c0_74 = arith.constant 0 : index
    %c0_75 = arith.constant 0 : index
    %71 = vector.load %arg9[%c0_74, %c0_75] : memref<32x1xf32, #tpu.memory_space<vmem>>, vector<32x1xf32>
    %72 = vector.broadcast %71 : vector<32x1xf32> to vector<32x256xf32>
    %73 = arith.addf %70, %72 : vector<32x256xf32>
    %cst_76 = arith.constant 0.000000e+00 : f32
    %74 = vector.broadcast %cst_76 : f32 to vector<32x256xf32>
    %75 = arith.maximumf %73, %74 : vector<32x256xf32>
    %c0_77 = arith.constant 0 : index
    %c17_78 = arith.constant 17 : index
    %76 = vector.load %arg12[%c0_77, %c17_78] : memref<32x290xf32, #tpu.memory_space<vmem>>, vector<32x256xf32>
    tpu.vector_store %arg12[%c0_77, %c17_78], %75 {strides = array<i32>} : memref<32x290xf32, #tpu.memory_space<vmem>>, vector<32x256xf32>,
    %c0_79 = arith.constant 0 : index
    %c0_80 = arith.constant 0 : index
    %77 = vector.load %arg12[%c0_79, %c0_80] : memref<32x290xf32, #tpu.memory_space<vmem>>, vector<32x256xf32>
    %78 = vector.broadcast %3 : vector<1x256xf32> to vector<32x256xf32>
    %79 = arith.mulf %77, %78 : vector<32x256xf32>
    %c0_81 = arith.constant 0 : index
    %c0_82 = arith.constant 0 : index
    %c0_83 = arith.constant 0 : index
    %c0_84 = arith.constant 0 : index
    %80 = vector.load %arg7[%c0_81, %c0_82, %c0_83, %c0_84] : memref<3x3x32x32xf32, #tpu.memory_space<vmem>>, vector<1x1x32x32xf32>
    %81 = vector.shape_cast %80 : vector<1x1x32x32xf32> to vector<32x32xf32>
    %cst_85 = arith.constant dense<0.000000e+00> : vector<32x256xf32>
    %82 = tpu.matmul %81, %79, %cst_85 {dimension_numbers = #tpu.dot_dimension_numbers<[1], [0], [0], [1], [0, 0, 1, 1], [], []>} : vector<32x32xf32>, vector<32x256xf32>, vector<32x256xf32> -> vector<32x256xf32>
    %c0_86 = arith.constant 0 : index
    %c1_87 = arith.constant 1 : index
    %83 = vector.load %arg12[%c0_86, %c1_87] : memref<32x290xf32, #tpu.memory_space<vmem>>, vector<32x256xf32>
    %c0_88 = arith.constant 0 : index
    %c1_89 = arith.constant 1 : index
    %c0_90 = arith.constant 0 : index
    %c0_91 = arith.constant 0 : index
    %84 = vector.load %arg7[%c0_88, %c1_89, %c0_90, %c0_91] : memref<3x3x32x32xf32, #tpu.memory_space<vmem>>, vector<1x1x32x32xf32>
    %85 = vector.shape_cast %84 : vector<1x1x32x32xf32> to vector<32x32xf32>
    %cst_92 = arith.constant dense<0.000000e+00> : vector<32x256xf32>
    %86 = tpu.matmul %85, %83, %cst_92 {dimension_numbers = #tpu.dot_dimension_numbers<[1], [0], [0], [1], [0, 0, 1, 1], [], []>} : vector<32x32xf32>, vector<32x256xf32>, vector<32x256xf32> -> vector<32x256xf32>
    %87 = arith.addf %82, %86 : vector<32x256xf32>
    %c0_93 = arith.constant 0 : index
    %c2_94 = arith.constant 2 : index
    %88 = vector.load %arg12[%c0_93, %c2_94] : memref<32x290xf32, #tpu.memory_space<vmem>>, vector<32x256xf32>
    %89 = vector.broadcast %4 : vector<1x256xf32> to vector<32x256xf32>
    %90 = arith.mulf %88, %89 : vector<32x256xf32>
    %c0_95 = arith.constant 0 : index
    %c2_96 = arith.constant 2 : index
    %c0_97 = arith.constant 0 : index
    %c0_98 = arith.constant 0 : index
    %91 = vector.load %arg7[%c0_95, %c2_96, %c0_97, %c0_98] : memref<3x3x32x32xf32, #tpu.memory_space<vmem>>, vector<1x1x32x32xf32>
    %92 = vector.shape_cast %91 : vector<1x1x32x32xf32> to vector<32x32xf32>
    %cst_99 = arith.constant dense<0.000000e+00> : vector<32x256xf32>
    %93 = tpu.matmul %92, %90, %cst_99 {dimension_numbers = #tpu.dot_dimension_numbers<[1], [0], [0], [1], [0, 0, 1, 1], [], []>} : vector<32x32xf32>, vector<32x256xf32>, vector<32x256xf32> -> vector<32x256xf32>
    %94 = arith.addf %87, %93 : vector<32x256xf32>
    %c0_100 = arith.constant 0 : index
    %c16_101 = arith.constant 16 : index
    %95 = vector.load %arg12[%c0_100, %c16_101] : memref<32x290xf32, #tpu.memory_space<vmem>>, vector<32x256xf32>
    %96 = vector.broadcast %3 : vector<1x256xf32> to vector<32x256xf32>
    %97 = arith.mulf %95, %96 : vector<32x256xf32>
    %c1_102 = arith.constant 1 : index
    %c0_103 = arith.constant 0 : index
    %c0_104 = arith.constant 0 : index
    %c0_105 = arith.constant 0 : index
    %98 = vector.load %arg7[%c1_102, %c0_103, %c0_104, %c0_105] : memref<3x3x32x32xf32, #tpu.memory_space<vmem>>, vector<1x1x32x32xf32>
    %99 = vector.shape_cast %98 : vector<1x1x32x32xf32> to vector<32x32xf32>
    %cst_106 = arith.constant dense<0.000000e+00> : vector<32x256xf32>
    %100 = tpu.matmul %99, %97, %cst_106 {dimension_numbers = #tpu.dot_dimension_numbers<[1], [0], [0], [1], [0, 0, 1, 1], [], []>} : vector<32x32xf32>, vector<32x256xf32>, vector<32x256xf32> -> vector<32x256xf32>
    %101 = arith.addf %94, %100 : vector<32x256xf32>
    %c0_107 = arith.constant 0 : index
    %c17_108 = arith.constant 17 : index
    %102 = vector.load %arg12[%c0_107, %c17_108] : memref<32x290xf32, #tpu.memory_space<vmem>>, vector<32x256xf32>
    %c1_109 = arith.constant 1 : index
    %c1_110 = arith.constant 1 : index
    %c0_111 = arith.constant 0 : index
    %c0_112 = arith.constant 0 : index
    %103 = vector.load %arg7[%c1_109, %c1_110, %c0_111, %c0_112] : memref<3x3x32x32xf32, #tpu.memory_space<vmem>>, vector<1x1x32x32xf32>
    %104 = vector.shape_cast %103 : vector<1x1x32x32xf32> to vector<32x32xf32>
    %cst_113 = arith.constant dense<0.000000e+00> : vector<32x256xf32>
    %105 = tpu.matmul %104, %102, %cst_113 {dimension_numbers = #tpu.dot_dimension_numbers<[1], [0], [0], [1], [0, 0, 1, 1], [], []>} : vector<32x32xf32>, vector<32x256xf32>, vector<32x256xf32> -> vector<32x256xf32>
    %106 = arith.addf %101, %105 : vector<32x256xf32>
    %c0_114 = arith.constant 0 : index
    %c18_115 = arith.constant 18 : index
    %107 = vector.load %arg12[%c0_114, %c18_115] : memref<32x290xf32, #tpu.memory_space<vmem>>, vector<32x256xf32>
    %108 = vector.broadcast %4 : vector<1x256xf32> to vector<32x256xf32>
    %109 = arith.mulf %107, %108 : vector<32x256xf32>
    %c1_116 = arith.constant 1 : index
    %c2_117 = arith.constant 2 : index
    %c0_118 = arith.constant 0 : index
    %c0_119 = arith.constant 0 : index
    %110 = vector.load %arg7[%c1_116, %c2_117, %c0_118, %c0_119] : memref<3x3x32x32xf32, #tpu.memory_space<vmem>>, vector<1x1x32x32xf32>
    %111 = vector.shape_cast %110 : vector<1x1x32x32xf32> to vector<32x32xf32>
    %cst_120 = arith.constant dense<0.000000e+00> : vector<32x256xf32>
    %112 = tpu.matmul %111, %109, %cst_120 {dimension_numbers = #tpu.dot_dimension_numbers<[1], [0], [0], [1], [0, 0, 1, 1], [], []>} : vector<32x32xf32>, vector<32x256xf32>, vector<32x256xf32> -> vector<32x256xf32>
    %113 = arith.addf %106, %112 : vector<32x256xf32>
    %c0_121 = arith.constant 0 : index
    %c32_122 = arith.constant 32 : index
    %114 = vector.load %arg12[%c0_121, %c32_122] : memref<32x290xf32, #tpu.memory_space<vmem>>, vector<32x256xf32>
    %115 = vector.broadcast %3 : vector<1x256xf32> to vector<32x256xf32>
    %116 = arith.mulf %114, %115 : vector<32x256xf32>
    %c2_123 = arith.constant 2 : index
    %c0_124 = arith.constant 0 : index
    %c0_125 = arith.constant 0 : index
    %c0_126 = arith.constant 0 : index
    %117 = vector.load %arg7[%c2_123, %c0_124, %c0_125, %c0_126] : memref<3x3x32x32xf32, #tpu.memory_space<vmem>>, vector<1x1x32x32xf32>
    %118 = vector.shape_cast %117 : vector<1x1x32x32xf32> to vector<32x32xf32>
    %cst_127 = arith.constant dense<0.000000e+00> : vector<32x256xf32>
    %119 = tpu.matmul %118, %116, %cst_127 {dimension_numbers = #tpu.dot_dimension_numbers<[1], [0], [0], [1], [0, 0, 1, 1], [], []>} : vector<32x32xf32>, vector<32x256xf32>, vector<32x256xf32> -> vector<32x256xf32>
    %120 = arith.addf %113, %119 : vector<32x256xf32>
    %c0_128 = arith.constant 0 : index
    %c33_129 = arith.constant 33 : index
    %121 = vector.load %arg12[%c0_128, %c33_129] : memref<32x290xf32, #tpu.memory_space<vmem>>, vector<32x256xf32>
    %c2_130 = arith.constant 2 : index
    %c1_131 = arith.constant 1 : index
    %c0_132 = arith.constant 0 : index
    %c0_133 = arith.constant 0 : index
    %122 = vector.load %arg7[%c2_130, %c1_131, %c0_132, %c0_133] : memref<3x3x32x32xf32, #tpu.memory_space<vmem>>, vector<1x1x32x32xf32>
    %123 = vector.shape_cast %122 : vector<1x1x32x32xf32> to vector<32x32xf32>
    %cst_134 = arith.constant dense<0.000000e+00> : vector<32x256xf32>
    %124 = tpu.matmul %123, %121, %cst_134 {dimension_numbers = #tpu.dot_dimension_numbers<[1], [0], [0], [1], [0, 0, 1, 1], [], []>} : vector<32x32xf32>, vector<32x256xf32>, vector<32x256xf32> -> vector<32x256xf32>
    %125 = arith.addf %120, %124 : vector<32x256xf32>
    %c0_135 = arith.constant 0 : index
    %c34_136 = arith.constant 34 : index
    %126 = vector.load %arg12[%c0_135, %c34_136] : memref<32x290xf32, #tpu.memory_space<vmem>>, vector<32x256xf32>
    %127 = vector.broadcast %4 : vector<1x256xf32> to vector<32x256xf32>
    %128 = arith.mulf %126, %127 : vector<32x256xf32>
    %c2_137 = arith.constant 2 : index
    %c2_138 = arith.constant 2 : index
    %c0_139 = arith.constant 0 : index
    %c0_140 = arith.constant 0 : index
    %129 = vector.load %arg7[%c2_137, %c2_138, %c0_139, %c0_140] : memref<3x3x32x32xf32, #tpu.memory_space<vmem>>, vector<1x1x32x32xf32>
    %130 = vector.shape_cast %129 : vector<1x1x32x32xf32> to vector<32x32xf32>
    %cst_141 = arith.constant dense<0.000000e+00> : vector<32x256xf32>
    %131 = tpu.matmul %130, %128, %cst_141 {dimension_numbers = #tpu.dot_dimension_numbers<[1], [0], [0], [1], [0, 0, 1, 1], [], []>} : vector<32x32xf32>, vector<32x256xf32>, vector<32x256xf32> -> vector<32x256xf32>
    %132 = arith.addf %125, %131 : vector<32x256xf32>
    %c0_142 = arith.constant 0 : index
    %c0_143 = arith.constant 0 : index
    %133 = vector.load %arg10[%c0_142, %c0_143] : memref<32x1xf32, #tpu.memory_space<vmem>>, vector<32x1xf32>
    %134 = vector.broadcast %133 : vector<32x1xf32> to vector<32x256xf32>
    %135 = arith.addf %132, %134 : vector<32x256xf32>
    %cst_144 = arith.constant 0.000000e+00 : f32
    %136 = vector.broadcast %cst_144 : f32 to vector<32x256xf32>
    %137 = arith.maximumf %135, %136 : vector<32x256xf32>
    %c0_145 = arith.constant 0 : index
    %c0_146 = arith.constant 0 : index
    %c0_147 = arith.constant 0 : index
    %138 = vector.load %arg11[%c0_145, %c0_146, %c0_147] : memref<1x32x256xf32, #tpu.memory_space<vmem>>, vector<1x32x256xf32>
    %139 = vector.shape_cast %138 : vector<1x32x256xf32> to vector<32x256xf32>
    %140 = vector.shape_cast %137 : vector<32x256xf32> to vector<1x32x256xf32>
    tpu.vector_store %arg11[%c0_145, %c0_146, %c0_147], %140 {strides = array<i32>} : memref<1x32x256xf32, #tpu.memory_space<vmem>>, vector<1x32x256xf32>,
    return
  }
  func.func @transform_0(%arg0: i32) -> (i32, i32, i32) {
    %c0_i32 = arith.constant 0 : i32
    %c0_i32_0 = arith.constant 0 : i32
    %c0_i32_1 = arith.constant 0 : i32
    return %arg0, %c0_i32, %c0_i32_0 : i32, i32, i32
  }
  func.func @transform_1(%arg0: i32) -> (i32, i32) {
    %c0_i32 = arith.constant 0 : i32
    %c0_i32_0 = arith.constant 0 : i32
    %c0_i32_1 = arith.constant 0 : i32
    return %c0_i32, %c0_i32_0 : i32, i32
  }
  func.func @transform_2(%arg0: i32) -> (i32, i32) {
    %c0_i32 = arith.constant 0 : i32
    %c0_i32_0 = arith.constant 0 : i32
    %c0_i32_1 = arith.constant 0 : i32
    return %c0_i32, %c0_i32_0 : i32, i32
  }
  func.func @transform_3(%arg0: i32) -> (i32, i32) {
    %c0_i32 = arith.constant 0 : i32
    %c0_i32_0 = arith.constant 0 : i32
    %c0_i32_1 = arith.constant 0 : i32
    return %c0_i32, %c0_i32_0 : i32, i32
  }
  func.func @transform_4(%arg0: i32) -> (i32, i32) {
    %c0_i32 = arith.constant 0 : i32
    %c0_i32_0 = arith.constant 0 : i32
    %c0_i32_1 = arith.constant 0 : i32
    return %c0_i32, %c0_i32_0 : i32, i32
  }
  func.func @transform_5(%arg0: i32) -> (i32, i32, i32, i32) {
    %c0_i32 = arith.constant 0 : i32
    %c0_i32_0 = arith.constant 0 : i32
    %c0_i32_1 = arith.constant 0 : i32
    %c0_i32_2 = arith.constant 0 : i32
    %c0_i32_3 = arith.constant 0 : i32
    return %c0_i32, %c0_i32_0, %c0_i32_1, %c0_i32_2 : i32, i32, i32, i32
  }
  func.func @transform_6(%arg0: i32) -> (i32, i32, i32, i32) {
    %c0_i32 = arith.constant 0 : i32
    %c0_i32_0 = arith.constant 0 : i32
    %c0_i32_1 = arith.constant 0 : i32
    %c0_i32_2 = arith.constant 0 : i32
    %c0_i32_3 = arith.constant 0 : i32
    return %c0_i32, %c0_i32_0, %c0_i32_1, %c0_i32_2 : i32, i32, i32, i32
  }
  func.func @transform_7(%arg0: i32) -> (i32, i32) {
    %c0_i32 = arith.constant 0 : i32
    %c0_i32_0 = arith.constant 0 : i32
    %c0_i32_1 = arith.constant 0 : i32
    return %c0_i32, %c0_i32_0 : i32, i32
  }
  func.func @transform_8(%arg0: i32) -> (i32, i32) {
    %c0_i32 = arith.constant 0 : i32
    %c0_i32_0 = arith.constant 0 : i32
    %c0_i32_1 = arith.constant 0 : i32
    return %c0_i32, %c0_i32_0 : i32, i32
  }
  func.func @transform_9(%arg0: i32) -> (i32, i32) {
    %c0_i32 = arith.constant 0 : i32
    %c0_i32_0 = arith.constant 0 : i32
    %c0_i32_1 = arith.constant 0 : i32
    return %c0_i32, %c0_i32_0 : i32, i32
  }
  func.func @transform_10(%arg0: i32) -> (i32, i32, i32) {
    %c0_i32 = arith.constant 0 : i32
    %c0_i32_0 = arith.constant 0 : i32
    %c0_i32_1 = arith.constant 0 : i32
    return %arg0, %c0_i32, %c0_i32_0 : i32, i32, i32
  }
}

</mosaic_0001>

<bundles_post_ra>
// kernel: _lambda_.1
= control target key start
LH: loop header
LB: loop body
LE: loop exit
PB: predicated region body
PF: predicated region fallthrough
CT: control target
= control target key end

     0   :  { %15 = vsyncpa [#allocation4], 0  ;;  %s6445_s0 = inlined_call_operand.vmem [shape: f32[2,32,64], index: 0, kind: input, shape index: {}]   ;;  %s6446_s1 = inlined_call_operand.hbm [shape: f32[64,256], index: 1, kind: input, shape index: {}]   ;;  %s6447_s2 = inlined_call_operand.vmem [shape: f32[1,256], index: 2, kind: input, shape index: {}]   ;;  %s6448_s3 = inlined_call_operand.vmem [shape: f32[1,256], index: 3, kind: input, shape index: {}]   ;;  %s6449_s4 = inlined_call_operand.hbm [shape: f32[32,32], index: 4, kind: input, shape index: {}]   ;;  %s6450_s5 = inlined_call_operand.vmem [shape: f32[3,3,32,32], index: 5, kind: input, shape index: {}]   ;;  %s6451_s6 = inlined_call_operand.hbm [shape: f32[3,3,32,32], index: 6, kind: input, shape index: {}]   ;;  %s6452_s7 = inlined_call_operand.vmem [shape: f32[32,1], index: 7, kind: input, shape index: {}]   ;;  %s6453_s8 = inlined_call_operand.vmem [shape: f32[32,1], index: 8, kind: input, shape index: {}]   ;;  %s6454_s9 = inlined_call_operand.vmem [shape: f32[32,1], index: 9, kind: input, shape index: {}]   ;;  %s6455_s10 = inlined_call_operand.vmem [shape: f32[2,32,256], index: 10, kind: output, shape index: {}]  }
   0x1   :  { %16 = vsyncpa [#allocation6], 0  ;;  %s5149_s13 = smov 0  }
   0x2 LB: > { %s5071_s14 = smov [#allocation5]   ;;  %s5155_s16 = sadd.s32 4294967295, %s5069_s13   ;;  %s5069_s13 = sphi %s5149_s13, %s22_s13  }
   0x3   : > { %s299_s15 = sshll.u32 %s5071_s14, 4  ;;  %p3979_p0 = scmp.ge.s32.totalorder %s5069_s13, 1  ;;  %s5164_s15 = int_to_ptr.vmem [resolvable:$true] %s299_s15 }
   0x4   : > { %p268_p1 = scmp.lt.s32.totalorder %s5069_s13, 3  ;;  %p6456_p2 = scmp.eq.s32.totalorder %s5155_s16, 0 }
   0x5   : > { %s5072_s18 = smov [#allocation3]   ;;  %s5073_s21 = smov [#allocation7]  }
   0x6   : > { %p5160_p3 = pnand %p3979_p0, %p268_p1  ;;  %s280_s19 = sshll.u32 %s5072_s18, 4  ;;  %s5168_s19 = int_to_ptr.vmem [resolvable:$true] %s280_s19 }
   0x7   : > { %s5176_s22 = sshll.u32 %s5073_s21, 4  ;;  %s4971_s25 = scalar_lea.hbm %s6449_s4, 512  ;;  %s316_s22 = int_to_ptr.vmem [resolvable:$true] %s5176_s22 }
   0x8   : > { %s6460_s17 = scalar_select %p5160_p3, 1, 0 }
   0x9   : > { %p4442_p4 = pneg %p5160_p3  ;;  %p4972_p6 = scmp.ne.s32.totalorder %s6449_s4, %s4971_s25 }
   0xa   : > { %p4978_p10 = scmp.lt.u32.totalorder %s4971_s25, %s6449_s4 }
   0xb   : > { %p5172_p5 = pnand %p6456_p2, %p4442_p4 }
   0xd   : > { %p5186_p7 = pneg %p5172_p5 }
   0xf   : > { %p4974_p8 = pnand %p5186_p7, %p4972_p6 }
  0x11   : > { %p4975_p9 = pneg %p4974_p8 }
  0x13   : > { %p4980_p11 = pnand %p4978_p10, %p4975_p9 }
  0x15   : > { %4983 = shalt.err (!%p4980_p11)
}
  0x16   : > { %s4984_s11 = scalar_lea.vmem %s5164_s15, 512  ;;  %p4992_p1 = scmp.lt.s32.totalorder %s5164_s15, %s5164_s15 }
  0x17   : > { %p4985_p12 = scmp.ne.s32.totalorder %s5164_s15, %s4984_s11  ;;  %p4993_p4 = scmp.lt.s32.totalorder %s4984_s11, %s4984_s11 }
  0x19   : > { %p4987_p13 = pnand %p4985_p12, %p5186_p7  ;;  %p4994_p6 = por %p4993_p4, %p4992_p1 }
  0x1b   : > { %p4988_p0 = pneg %p4987_p13 }
  0x1d   : > { %p4995_p8 = pnand %p4994_p6, %p4988_p0 }
  0x1f   : > { %4998 = shalt.err (!%p4995_p8)
}
  0x20   : > { %s5074_s12 = smov 128   ;;  %s5075_s14 = smov 8  }
  0x21   : > { %4448 = dma.hbm_to_vmem [thread:$0]  (!%p5172_p5), %s6449_s4, 512, %s5164_s15, [#allocation6], %s5074_s12, %s5074_s12, %s5075_s14  }
  0x22   : > { %s4999_s25 = scalar_lea.hbm %s6446_s1, 2048 }
  0x23   : > { %p5000_p9 = scmp.ne.s32.totalorder %s6446_s1, %s4999_s25  ;;  %p5006_p12 = scmp.lt.u32.totalorder %s4999_s25, %s6446_s1 }
  0x25   : > { %p5002_p10 = pnand %p5000_p9, %p5186_p7 }
  0x27   : > { %p5003_p11 = pneg %p5002_p10 }
  0x29   : > { %p5008_p13 = pnand %p5006_p12, %p5003_p11 }
  0x2b   : > { %5011 = shalt.err (!%p5008_p13)
}
  0x2c   : > { %s5012_s15 = scalar_lea.vmem %s5168_s19, 2048  ;;  %p5020_p6 = scmp.lt.s32.totalorder %s5168_s19, %s5168_s19 }
  0x2d   : > { %p5013_p0 = scmp.ne.s32.totalorder %s5168_s19, %s5012_s15  ;;  %p5021_p8 = scmp.lt.s32.totalorder %s5012_s15, %s5012_s15 }
  0x2f   : > { %p5015_p1 = pnand %p5013_p0, %p5186_p7  ;;  %p5022_p9 = por %p5021_p8, %p5020_p6 }
  0x31   : > { %p5016_p4 = pneg %p5015_p1 }
  0x33   : > { %p5023_p10 = pnand %p5022_p9, %p5016_p4 }
  0x35   : > { %5026 = shalt.err (!%p5023_p10)
}
  0x36   : > { %s5076_s11 = smov 256   ;;  %s5077_s18 = smov 16  }
  0x37   : > { %4445 = dma.hbm_to_vmem [thread:$0]  (!%p5172_p5), %s6446_s1, 2048, %s5168_s19, [#allocation4], %s5076_s11, %s5076_s11, %s5077_s18  }
  0x38   : > { %s5027_s26 = scalar_lea.hbm %s6451_s6, 4608 }
  0x39   : > { %p5028_p11 = scmp.ne.s32.totalorder %s6451_s6, %s5027_s26  ;;  %p5034_p0 = scmp.lt.u32.totalorder %s5027_s26, %s6451_s6 }
  0x3b   : > { %p5030_p12 = pnand %p5028_p11, %p5186_p7 }
  0x3d   : > { %p5031_p13 = pneg %p5030_p12 }
  0x3f   : > { %p5036_p1 = pnand %p5034_p0, %p5031_p13 }
  0x41   : > { %5039 = shalt.err (!%p5036_p1)
}
  0x42   : > { %s5040_s21 = scalar_lea.vmem %s316_s22, 4608  ;;  %p5048_p9 = scmp.lt.s32.totalorder %s316_s22, %s316_s22 }
  0x43   : > { %p5041_p4 = scmp.ne.s32.totalorder %s316_s22, %s5040_s21  ;;  %p5049_p10 = scmp.lt.s32.totalorder %s5040_s21, %s5040_s21 }
  0x45   : > { %p5043_p6 = pnand %p5041_p4, %p5186_p7  ;;  %p5050_p2 = por %p5049_p10, %p5048_p9 }
  0x47   : > { %p5044_p8 = pneg %p5043_p6 }
  0x49   : > { %p5051_p3 = pnand %p5050_p2, %p5044_p8 }
  0x4b   : > { %5054 = shalt.err (!%p5051_p3)
}
  0x4c   : > { %4451 = dma.hbm_to_vmem [thread:$0]  (!%p5172_p5), %s6451_s6, 4608, %s316_s22, [#allocation6], %s5074_s12, %s5074_s12, %s5075_s14  }
  0x4d   : > { %p6463_p11 = scmp.ne.s32.totalorder %s6460_s17, 0 }
  0x4e   : > { %p6464_p7 = scmp.eq.s32.totalorder (!%p6463_p11), %s5155_s16, 0 }
  0x4f   : > { %348 = sbr.rel (%p6463_p11) target bundleno = 1804 (0x70c), region = 60 }
  0x56   : > { %5060 = dma.done.wait (%p6464_p7), [#allocation4], 2048   ;;  %p6465_p12 = pmov %p6464_p7 }
  0x57   : > { %p6466_p2 = pmov %p6464_p7 }
  0x58   : > { %5062 = vsyncadd (%p6465_p12), [#allocation4], 4294965248 }
  0x59   : > { %5064 = dma.done.wait (%p6466_p2), [#allocation6], 5120   ;;  %p6467_p3 = pmov %p6466_p2 }
  0x5a   : > { %p394_p13 = scmp.lt.s32.totalorder %s5155_s16, 1  ;;  %v5078_v0 = vmov 0   ;;  %vm448_vm0 = vcmask 261120   ;;  %v416_v6 = vld [vmem:[#allocation5] sm:$0xff]  ;;  %v425_v9 = vld [vmem:[%s6452_s7 + $0x8] sm:$0xff]  ;;  %v426_v10 = vld [vmem:[%s6452_s7 + $0x10] sm:$0xff]  ;;  %v726_v54 = vlaneseq }
  0x5b   : > { %5066 = vsyncadd (%p6467_p3), [#allocation6], 4294962176  ;;  %4489 = vset.pattern.permute.xlu0 %v5078_v0  ;;  %4490 = vset.pattern.permute.xlu1 %v5078_v0  ;;  %v424_v8 = vld [vmem:[%s6452_s7] sm:$0xff]  ;;  %v427_v11 = vld [vmem:[%s6452_s7 + $0x18] sm:$0xff]  ;;  %v6458_v39 = vmov 0.0   ;;  %vm562_vm1 = vcmask 523264  }
  0x5c   : > { %s6475_s16 = smov (!%p394_p13, %s5155_s16), 1  ;;  %4124 = vmatprep.mubr.msk.f32.mxu0 %vm448_vm0, %v416_v6  ;;  %430 = vperm.xlu0 %4489, %v424_v8   ;;  %v547_v12 = vld [vmem:[#allocation3 + $0x8] sm:$0xff]  ;;  %v549_v13 = vld [vmem:[#allocation3 + $0x18] sm:$0xff]  ;;  %v546_v14 = vld [vmem:[#allocation3] sm:$0xff]  ;;  %vm404_vm2 = vcmask 138240   ;;  %vm409_vm3 = vcmask 277640  }
  0x5d   : > { %s4106_s17 = sshll.u32 %s6475_s16, 5  ;;  %440 = vperm.xlu1 %4490, %v426_v10   ;;  %v4138_v15 = vpack.c.bf16 %v549_v13, %v547_v12  ;;  %v548_v16 = vld [vmem:[#allocation3 + $0x10] sm:$0xff]  ;;  %v551_v17 = vld [vmem:[#allocation3 + $0x28] sm:$0xff]  ;;  %v553_v18 = vld [vmem:[#allocation3 + $0x38] sm:$0xff]  ;;  %639 = vmatprep.mubr.f32.mxu1 %v6458_v39  ;;  %405 = vst.msk [vmem:[#allocation2] sm:$0xff] %vm404_vm2, %v6458_v39  ;;  %s5080_s29 = smov 17  }
  0x5e   : > { %s398_s28 = scalar_lea.vmem %s6445_s0, %s4106_s17  ;;  %v4140_v19 = vpack.c.bf16 %v548_v16, %v546_v14  ;;  %v4142_v20 = vpack.c.bf16 %v553_v18, %v551_v17  ;;  %v550_v21 = vld [vmem:[#allocation3 + $0x20] sm:$0xff]  ;;  %v552_v22 = vld [vmem:[#allocation3 + $0x30] sm:$0xff]  ;;  %v555_v23 = vld [vmem:[#allocation3 + $0x48] sm:$0xff]  ;;  %406 = vst.msk [vmem:[#allocation2 + $0x18] sm:$0xff] %vm404_vm2, %v6458_v39  ;;  %v727_v57 = vshrl.u32 %v726_v54, 7  ;;  %s5081_s11 = smov 2  }
  0x5f   : > { %v420_v1 = vld [vmem:[%s398_s28] sm:$0xff]  ;;  %v421_v2 = vld [vmem:[%s398_s28 + $0x8] sm:$0xff]  ;;  %v422_v3 = vld [vmem:[%s398_s28 + $0x10] sm:$0xff]  ;;  %4139 = vmatprep.subr.bf16.mxu1 %v4138_v15  ;;  %v4144_v27 = vpack.c.bf16 %v552_v22, %v550_v21  ;;  %407 = vst.msk [vmem:[#allocation2 + $0x30] sm:$0xff] %vm404_vm2, %v6458_v39  ;;  %s5082_s17 = smov 16   ;;  %vm704_vm4 = vcmask 1047688  }
  0x60   : > { %v4130_v4 = vpack.c.bf16 %v421_v2, %v420_v1  ;;  %v423_v5 = vld [vmem:[%s398_s28 + $0x18] sm:$0xff]  ;;  %435 = vperm.xlu0 %4489, %v425_v9   ;;  %v417_v25 = vld [vmem:[#allocation5 + $0x8] sm:$0xff]  ;;  %v418_v26 = vld [vmem:[#allocation5 + $0x10] sm:$0xff]  ;;  %4141 = vmatpush1.bf16.msra.mxu1 %v4140_v19  ;;  %408 = vst.msk [vmem:[#allocation2 + $0x48] sm:$0xff] %vm404_vm2, %v6458_v39  ;;  %v728_v60 = vsub.s32 0, %v727_v57  ;;  %v732_v62 = vsub.s32 1, %v727_v57 }
  0x61   : > { %v4134_v7 = vpack.c.bf16 %v423_v5, %v422_v3  ;;  %v557_v24 = vld [vmem:[#allocation3 + $0x58] sm:$0xff]  ;;  %445 = vperm.xlu1 %4490, %v427_v11   ;;  %4143 = vmatprep.subr.bf16.mxu1 %v4142_v20  ;;  %v554_v29 = vld [vmem:[#allocation3 + $0x40] sm:$0xff]  ;;  %v556_v30 = vld [vmem:[#allocation3 + $0x50] sm:$0xff]  ;;  %410 = vst.msk [vmem:[#allocation2 + $0x10] sm:$0xff] %vm409_vm3, %v6458_v39  ;;  %s5083_s20 = smov 127   ;;  %vm1025_vm5 = vcmask 15360  }
  0x62   : > { %4131 = vmatprep.subr.bf16.mxu0 %v4130_v4  ;;  %v4146_v28 = vpack.c.bf16 %v557_v24, %v555_v23  ;;  %v559_v31 = vld [vmem:[#allocation3 + $0x68] sm:$0xff]  ;;  %v561_v32 = vld [vmem:[#allocation3 + $0x78] sm:$0xff]  ;;  %v4148_v34 = vpack.c.bf16 %v556_v30, %v554_v29  ;;  %v558_v36 = vld [vmem:[#allocation3 + $0x60] sm:$0xff]  ;;  %411 = vst.msk [vmem:[#allocation2 + $0x28] sm:$0xff] %vm409_vm3, %v6458_v39  ;;  %s5084_s22 = smov 18   ;;  %s5085_s28 = smov 126  }
  0x63   : > { %4133 = vmatpush3.bf16.msra.mxu0 %v4130_v4  ;;  %v419_v33 = vld [vmem:[#allocation5 + $0x18] sm:$0xff]  ;;  %v4150_v35 = vpack.c.bf16 %v561_v32, %v559_v31  ;;  %v560_v37 = vld [vmem:[#allocation3 + $0x70] sm:$0xff]  ;;  %412 = vst.msk [vmem:[#allocation2 + $0x40] sm:$0xff] %vm409_vm3, %v6458_v39  ;;  %413 = vst.msk [vmem:[#allocation2 + $0x58] sm:$0xff] %vm409_vm3, %v6458_v39  ;;  %vm1213_vm6 = vcmask 130048   ;;  %s5086_s12 = smov 32  }
  0x64   : > { %4135 = vmatprep.subr.bf16.mxu0 %v4134_v7  ;;  %4145 = vmatpush1.bf16.msra.mxu1 %v4144_v27  ;;  %v4152_v38 = vpack.c.bf16 %v560_v37, %v558_v36  ;;  %v415_v61 = vld [vmem:[%s6448_s3] sm:$0x3]  ;;  %s5087_s14 = smov 112   ;;  %s5088_s18 = smov 111   ;;  %vm793_vm7 = vcmask 1039360   ;;  %vm1556_vm8 = vcmask 146432  }
  0x65   : > { %4147 = vmatprep.subr.bf16.mxu1 %v4146_v28  ;;  %v5321_v1 = vrot.slane %v415_v61, %v728_v60  ;;  %v414_v2 = vld [vmem:[%s6447_s2] sm:$0x3]  ;;  %v5327_v3 = vrot.slane %v415_v61, %v732_v62  ;;  %s5089_s23 = smov 34   ;;  %vm1083_vm9 = vcmask 1031168   ;;  %s5090_s26 = smov 110   ;;  %vm1271_vm10 = vcmask 916480  }
  0x66   : > { %v5330_v4 = vrot.slane %v414_v2, %v728_v60  ;;  %v5333_v5 = vrot.slane %v414_v2, %v732_v62  ;;  %s5092_s30 = smov 95   ;;  %vm1426_vm11 = vcmask 908288   ;;  %vm2086_vm12 = vcmask 277504   ;;  %s5093_s25 = smov 94  }
  0x67   : > { %4137 = vmatpush3.bf16.msra.mxu0 %v4134_v7  ;;  %vm1614_vm13 = vcmask 900096   ;;  %vm1801_vm14 = vcmask 785408   ;;  %vm1956_vm15 = vcmask 777216  }
  0x68   : > { %4149 = vmatpush1.bf16.msra.mxu1 %v4148_v34 }
  0x69   : > { %4151 = vmatprep.subr.bf16.mxu1 %v4150_v35 }
  0x6a   : > { %4125 = vmatmul.mubr.msk.f32.vlgmr.msra.gmra.mrb[0].mxu0 %vm448_vm0, %v417_v25 }
  0x6b   : > { %4127 = vmatprep.mubr.msk.f32.mxu0 %vm448_vm0, %v418_v26 }
  0x6c   : > { %4153 = vmatpush1.bf16.msra.mxu1 %v4152_v38 }
  0x6e   : > { %4128 = vmatmul.mubr.msk.f32.gmra.mrb[2].mxu0 %vm448_vm0, %v419_v33 }
  0x6f   : > { %886 = vmatprep.mubr.f32.mxu0 %v6458_v39 }
  0xdb   : > { %v431_v40 = vpop.permute.xlu0 %430 }
  0xdc   : > { %v441_v46 = vpop.permute.xlu1 %440 }
  0xdf   : > { %v436_v44 = vpop.permute.xlu0 %435 }
  0xe0   : > { %v446_v50 = vpop.permute.xlu1 %445 }
 0x13d   : > { %v4126_v41 = vpop.f32.mrb[0].mxu0 }
 0x13e   : > { %v527_v42 = vpop.f32.mrb[1].mxu0  ;;  %v533_v48 = vadd.f32 %v4126_v41, %v436_v44 }
 0x13f   : > { %v528_v43 = vadd.f32 %v527_v42, %v431_v40 }
 0x141   : > { %3996 = vmatmul.mubr.msk.f32.vlgmr.msra.gmra.mrb[0].mxu1 %vm562_vm1, %v528_v43  ;;  %v4129_v45 = vpop.f32.mrb[2].mxu0 }
 0x142   : > { %645 = vmatprep.mubr.f32.mxu1 %v6458_v39  ;;  %v537_v47 = vpop.f32.mrb[3].mxu0  ;;  %v543_v51 = vadd.f32 %v4129_v45, %v446_v50 }
 0x143   : > { %v538_v49 = vadd.f32 %v537_v47, %v441_v46 }
 0x145   : > { %3997 = vmatmul.mubr.msk.f32.gmra.mrb[2].mxu1 %vm562_vm1, %v533_v48 }
 0x146   : > { %651 = vmatprep.mubr.f32.mxu1 %v6458_v39 }
 0x149   : > { %3998 = vmatmul.mubr.msk.f32.gmra.mrb[4].mxu1 %vm562_vm1, %v538_v49 }
 0x14a   : > { %657 = vmatprep.mubr.f32.mxu1 %v6458_v39 }
 0x14d   : > { %3999 = vmatmul.mubr.msk.f32.gmra.mrb[6].mxu1 %vm562_vm1, %v543_v51  ;;  %vm2144_vm1 = vcmask 769024  }
 0x14e   : > { %2531 = vmatprep.mubr.f32.mxu1 %v6458_v39 }
 0x214   : > { %v641_v52 = vpop.f32.mrb[0].mxu1 }
 0x215   : > { %672 = vrot.lane.b32.xlu0 %v641_v52, %s5080_s29  ;;  %v643_v53 = vpop.f32.mrb[1].mxu1 }
 0x216   : > { %674 = vrot.lane.b32.xlu1 %v643_v53, %s5080_s29 }
 0x218   : > { %v647_v55 = vpop.f32.mrb[2].mxu1 }
 0x219   : > { %676 = vrot.lane.b32.xlu0 %v647_v55, %s5080_s29  ;;  %v649_v56 = vpop.f32.mrb[3].mxu1 }
 0x21a   : > { %678 = vrot.lane.b32.xlu1 %v649_v56, %s5080_s29 }
 0x21c   : > { %v653_v58 = vpop.f32.mrb[4].mxu1 }
 0x21d   : > { %680 = vrot.lane.b32.xlu0 %v653_v58, %s5080_s29  ;;  %v655_v59 = vpop.f32.mrb[5].mxu1 }
 0x21e   : > { %682 = vrot.lane.b32.xlu1 %v655_v59, %s5080_s29 }
 0x220   : > { %v659_v63 = vpop.f32.mrb[6].mxu1 }
 0x221   : > { %684 = vrot.lane.b32.xlu0 %v659_v63, %s5080_s29  ;;  %v661_v0 = vpop.f32.mrb[7].mxu1 }
 0x222   : > { %686 = vrot.lane.b32.xlu1 %v661_v0, %s5080_s29 }
 0x225   : > { %1021 = vrot.lane.b32.xlu0 %v5321_v1, %s5081_s11 }
 0x226   : > { %1023 = vrot.lane.b32.xlu1 %v5327_v3, %s5081_s11 }
 0x229   : > { %1209 = vrot.lane.b32.xlu0 %v5330_v4, %s5082_s17 }
 0x22a   : > { %1211 = vrot.lane.b32.xlu1 %v5333_v5, %s5082_s17  ;;  %s5091_s17 = smov 96  }
 0x287   : > { %v673_v6 = vpop.permute.xlu0 %672 }
 0x288   : > { %705 = vst.msk [vmem:[#allocation2] sm:$0xff] %vm704_vm4, %v673_v6  ;;  %v675_v7 = vpop.permute.xlu1 %674 }
 0x289   : > { %707 = vst.msk [vmem:[#allocation2 + $0x10] sm:$0xff] %vm404_vm2, %v675_v7  ;;  %v5342_v11 = vsel %vm404_vm2, %v673_v6, %v675_v7 }
 0x28b   : > { %v677_v8 = vpop.permute.xlu0 %676 }
 0x28c   : > { %708 = vst.msk [vmem:[#allocation2 + $0x18] sm:$0xff] %vm704_vm4, %v677_v8  ;;  %v679_v9 = vpop.permute.xlu1 %678 }
 0x28d   : > { %710 = vst.msk [vmem:[#allocation2 + $0x28] sm:$0xff] %vm404_vm2, %v679_v9  ;;  %v5359_v18 = vsel %vm404_vm2, %v677_v8, %v679_v9 }
 0x28f   : > { %v681_v10 = vpop.permute.xlu0 %680  ;;  %v5354_v16 = vld [vmem:[#allocation2] sm:$0xff] }
 0x290   : > { %711 = vst.msk [vmem:[#allocation2 + $0x30] sm:$0xff] %vm704_vm4, %v681_v10  ;;  %v683_v12 = vpop.permute.xlu1 %682  ;;  %v5345_v13 = vld [vmem:[#allocation2 + $0x10] sm:$0xff] }
 0x291   : > { %713 = vst.msk [vmem:[#allocation2 + $0x40] sm:$0xff] %vm404_vm2, %v683_v12  ;;  %v5350_v14 = vpack.i.bf16 %v5345_v13, %v5342_v11  ;;  %v5378_v23 = vsel %vm404_vm2, %v681_v10, %v683_v12 }
 0x293   : > { %v685_v15 = vpop.permute.xlu0 %684  ;;  %4492 = vrot.lane.b32.xlu0 %v5350_v14, %s5083_s20  ;;  %v5356_v17 = vld [vmem:[#allocation2 + $0x18] sm:$0xff] }
 0x294   : > { %714 = vst.msk [vmem:[#allocation2 + $0x48] sm:$0xff] %vm704_vm4, %v685_v15  ;;  %v687_v19 = vpop.permute.xlu1 %686  ;;  %v5362_v20 = vld [vmem:[#allocation2 + $0x28] sm:$0xff]  ;;  %v5366_v21 = vpack.i.bf16 %v5356_v17, %v5354_v16 }
 0x295   : > { %716 = vst.msk [vmem:[#allocation2 + $0x58] sm:$0xff] %vm404_vm2, %v687_v19  ;;  %v5371_v22 = vpack.i.bf16 %v5362_v20, %v5359_v18  ;;  %v5397_v30 = vsel %vm404_vm2, %v685_v15, %v687_v19 }
 0x297   : > { %4502 = vrot.lane.b32.xlu1 %v5371_v22, %s5083_s20  ;;  %4497 = vrot.lane.b32.xlu0 %v5366_v21, %s5083_s20  ;;  %v5386_v26 = vpop.permute.xlu0 %1021  ;;  %v5392_v28 = vld [vmem:[#allocation2 + $0x30] sm:$0xff] }
 0x298   : > { %v5380_v24 = vld [vmem:[#allocation2 + $0x40] sm:$0xff]  ;;  %v5388_v27 = vpop.permute.xlu1 %1023  ;;  %v1030_v42 = vmul.f32 %v5386_v26, %v5354_v16  ;;  %v1033_v43 = vmul.f32 %v5386_v26, %v5356_v17  ;;  %v1036_v53 = vmul.f32 %v5386_v26, %v5392_v28 }
 0x299   : > { %v5384_v25 = vpack.i.bf16 %v5380_v24, %v5378_v23  ;;  %v5411_v34 = vsel %vm1025_vm5, %v5386_v26, %v5388_v27  ;;  %v1035_v36 = vmul.f32 %v5388_v27, %v5362_v20  ;;  %v1032_v38 = vmul.f32 %v5388_v27, %v5345_v13 }
 0x29a   : > { %v1034_v35 = vmul.f32 %v5411_v34, %v5359_v18  ;;  %v1031_v37 = vmul.f32 %v5411_v34, %v5342_v11  ;;  %v4531_v44 = vpack.i.bf16 %v1033_v43, %v1030_v42  ;;  %v1037_v45 = vmul.f32 %v5411_v34, %v5378_v23 }
 0x29b   : > { %4507 = vrot.lane.b32.xlu1 %v5384_v25, %s5083_s20  ;;  %v5394_v29 = vld [vmem:[#allocation2 + $0x48] sm:$0xff]  ;;  %v1038_v46 = vmul.f32 %v5388_v27, %v5380_v24  ;;  %v5437_v47 = vpop.permute.xlu0 %1209  ;;  %v1040_v54 = vmul.f32 %v5411_v34, %v5397_v30 }
 0x29c   : > { %v5401_v31 = vpack.i.bf16 %v5394_v29, %v5392_v28  ;;  %v5403_v32 = vld [vmem:[#allocation2 + $0x58] sm:$0xff]  ;;  %v4526_v40 = vpack.i.bf16 %v1035_v36, %v1034_v35  ;;  %v4521_v41 = vpack.i.bf16 %v1032_v38, %v1031_v37  ;;  %v5439_v48 = vpop.permute.xlu1 %1211  ;;  %v1039_v50 = vmul.f32 %v5386_v26, %v5394_v29 }
 0x29d   : > { %v5407_v33 = vpack.i.bf16 %v5403_v32, %v5397_v30  ;;  %v4536_v49 = vpack.i.bf16 %v1038_v46, %v1037_v45  ;;  %v1041_v51 = vmul.f32 %v5388_v27, %v5403_v32  ;;  %v5449_v52 = vsel %vm1213_vm6, %v5437_v47, %v5439_v48 }
 0x29e   : > { %v1222_v55 = vmul.f32 %v5449_v52, %v5359_v18  ;;  %v1223_v56 = vmul.f32 %v5439_v48, %v5362_v20  ;;  %v4546_v57 = vpack.i.bf16 %v1039_v50, %v1036_v53  ;;  %v1219_v59 = vmul.f32 %v5449_v52, %v5342_v11 }
 0x29f   : > { %4517 = vrot.lane.b32.xlu1 %v5401_v31, %s5083_s20  ;;  %4512 = vrot.lane.b32.xlu0 %v5407_v33, %s5083_s20  ;;  %v4541_v58 = vpack.i.bf16 %v1041_v51, %v1040_v54  ;;  %v1220_v60 = vmul.f32 %v5439_v48, %v5345_v13  ;;  %v1225_v62 = vmul.f32 %v5449_v52, %v5378_v23 }
 0x2a0   : > { %v4556_v61 = vpack.i.bf16 %v1223_v56, %v1222_v55  ;;  %v1226_v0 = vmul.f32 %v5439_v48, %v5380_v24  ;;  %v1218_v2 = vmul.f32 %v5437_v47, %v5354_v16  ;;  %v1221_v6 = vmul.f32 %v5437_v47, %v5356_v17 }
 0x2a1   : > { %v4551_v63 = vpack.i.bf16 %v1220_v60, %v1219_v59  ;;  %v1224_v7 = vmul.f32 %v5437_v47, %v5392_v28  ;;  %v1227_v8 = vmul.f32 %v5437_v47, %v5394_v29  ;;  %v1228_v12 = vmul.f32 %v5449_v52, %v5397_v30 }
 0x2a2   : > { %v4566_v9 = vpack.i.bf16 %v1226_v0, %v1225_v62  ;;  %v4561_v10 = vpack.i.bf16 %v1221_v6, %v1218_v2  ;;  %v1229_v15 = vmul.f32 %v5439_v48, %v5403_v32  ;;  %v738_v0 = vmul.f32 %v5330_v4, %v5356_v17 }
 0x2a3   : > { %1554 = vrot.lane.b32.xlu1 %v5327_v3, %s5084_s22  ;;  %1552 = vrot.lane.b32.xlu0 %v5321_v1, %s5084_s22  ;;  %v4571_v19 = vpack.i.bf16 %v1227_v8, %v1224_v7 }
 0x2a4   : > { %v4576_v35 = vpack.i.bf16 %v1229_v15, %v1228_v12 }
 0x2a7   : > { %4527 = vrot.lane.b32.xlu1 %v4526_v40, %s5085_s28  ;;  %4522 = vrot.lane.b32.xlu0 %v4521_v41, %s5085_s28 }
 0x2ab   : > { %1740 = vrot.lane.b32.xlu1 %v5330_v4, %s5086_s12  ;;  %4532 = vrot.lane.b32.xlu0 %v4531_v44, %s5085_s28 }
 0x2af   : > { %4537 = vrot.lane.b32.xlu1 %v4536_v49, %s5085_s28  ;;  %1742 = vrot.lane.b32.xlu0 %v5333_v5, %s5086_s12 }
 0x2b3   : > { %4547 = vrot.lane.b32.xlu1 %v4546_v57, %s5085_s28  ;;  %4542 = vrot.lane.b32.xlu0 %v4541_v58, %s5085_s28  ;;  %v739_v58 = vmul.f32 %v5333_v5, %v5359_v18 }
 0x2b7   : > { %4557 = vrot.lane.b32.xlu1 %v4556_v61, %s5087_s14  ;;  %4552 = vrot.lane.b32.xlu0 %v4551_v63, %s5087_s14  ;;  %v737_v63 = vmul.f32 %v5333_v5, %v5342_v11 }
 0x2bb   : > { %4567 = vrot.lane.b32.xlu1 %v4566_v9, %s5087_s14  ;;  %4562 = vrot.lane.b32.xlu0 %v4561_v10, %s5087_s14 }
 0x2bf   : > { %4572 = vrot.lane.b32.xlu1 %v4571_v19, %s5087_s14  ;;  %4577 = vrot.lane.b32.xlu0 %v4576_v35, %s5087_s14  ;;  %v4162_v19 = vpack.c.bf16 %v739_v58, %v737_v63  ;;  %v736_v35 = vmul.f32 %v5330_v4, %v5354_v16  ;;  %v4001_v63 = vld [vmem:[%s6450_s5 + $0x28] sm:$0xff] }
 0x2c3   : > { %4587 = vrot.lane.b32.xlu1 %v5371_v22, %s5088_s18  ;;  %4582 = vrot.lane.b32.xlu0 %v5350_v14, %s5088_s18 }
 0x2c7   : > { %2082 = vrot.lane.b32.xlu1 %v5321_v1, %s5089_s23  ;;  %4592 = vrot.lane.b32.xlu0 %v5366_v21, %s5088_s18 }
 0x2cb   : > { %4597 = vrot.lane.b32.xlu1 %v5384_v25, %s5088_s18  ;;  %2084 = vrot.lane.b32.xlu0 %v5327_v3, %s5089_s23 }
 0x2cf   : > { %4607 = vrot.lane.b32.xlu1 %v5401_v31, %s5088_s18  ;;  %4602 = vrot.lane.b32.xlu0 %v5407_v33, %s5088_s18 }
 0x305   : > { %v4493_v36 = vpop.permute.xlu0 %4492 }
 0x306   : > { %v4495_v37 = vunpack.i.h.bf16 %v4493_v36  ;;  %v4494_v38 = vunpack.i.l.bf16 %v4493_v36 }
 0x308   : > { %v795_v46 = vsel %vm793_vm7, %v4494_v38, %v4495_v37 }
 0x309   : > { %v4503_v40 = vpop.permute.xlu1 %4502  ;;  %v4498_v1 = vpop.permute.xlu0 %4497 }
 0x30a   : > { %v4505_v41 = vunpack.i.h.bf16 %v4503_v40  ;;  %v4504_v42 = vunpack.i.l.bf16 %v4503_v40  ;;  %v4500_v43 = vunpack.i.h.bf16 %v4498_v1  ;;  %v4499_v44 = vunpack.i.l.bf16 %v4498_v1 }
 0x30b   : > { %v741_v40 = vmul.f32 %v5333_v5, %v5378_v23 }
 0x30c   : > { %v796_v45 = vsel %vm793_vm7, %v4500_v43, %v4504_v42  ;;  %v794_v3 = vsel %vm793_vm7, %v4499_v44, %v4494_v38  ;;  %v797_v49 = vsel %vm793_vm7, %v4504_v42, %v4505_v41  ;;  %v4164_v42 = vpack.c.bf16 %v738_v0, %v736_v35  ;;  %v4000_v44 = vld [vmem:[%s6450_s5 + $0x20] sm:$0xff] }
 0x30d   : > { %v4508_v50 = vpop.permute.xlu1 %4507  ;;  %v4154_v51 = vpack.c.bf16 %v797_v49, %v795_v46  ;;  %v4156_v53 = vpack.c.bf16 %v796_v45, %v794_v3  ;;  %v743_v43 = vmul.f32 %v5333_v5, %v5397_v30  ;;  %v742_v46 = vmul.f32 %v5330_v4, %v5394_v29 }
 0x30e   : > { %v4510_v54 = vunpack.i.h.bf16 %v4508_v50  ;;  %v4509_v55 = vunpack.i.l.bf16 %v4508_v50 }
 0x30f   : > { %4155 = vmatprep.subr.bf16.mxu0 %v4154_v51 }
 0x310   : > { %4157 = vmatpush1.bf16.msra.mxu0 %v4156_v53  ;;  %v799_v7 = vsel %vm793_vm7, %v4509_v55, %v4510_v54 }
 0x311   : > { %v4518_v56 = vpop.permute.xlu1 %4517  ;;  %v4513_v57 = vpop.permute.xlu0 %4512 }
 0x312   : > { %v4520_v59 = vunpack.i.h.bf16 %v4518_v56  ;;  %v4519_v60 = vunpack.i.l.bf16 %v4518_v56  ;;  %v4515_v61 = vunpack.i.h.bf16 %v4513_v57  ;;  %v4514_v62 = vunpack.i.l.bf16 %v4513_v57 }
 0x314   : > { %v798_v2 = vsel %vm793_vm7, %v4519_v60, %v4509_v55  ;;  %v800_v6 = vsel %vm793_vm7, %v4520_v59, %v4514_v62  ;;  %v801_v8 = vsel %vm793_vm7, %v4514_v62, %v4515_v61  ;;  %v4166_v60 = vpack.c.bf16 %v743_v43, %v741_v40 }
 0x315   : > { %v5517_v9 = vpop.permute.xlu1 %1554  ;;  %v5519_v10 = vpop.permute.xlu0 %1552  ;;  %v4158_v12 = vpack.c.bf16 %v801_v8, %v799_v7  ;;  %v4160_v15 = vpack.c.bf16 %v800_v6, %v798_v2  ;;  %v740_v61 = vmul.f32 %v5330_v4, %v5392_v28 }
 0x316   : > { %v5525_v36 = vsel %vm1556_vm8, %v5519_v10, %v5517_v9  ;;  %v1566_v37 = vmul.f32 %v5517_v9, %v5362_v20  ;;  %v1563_v38 = vmul.f32 %v5517_v9, %v5345_v13  ;;  %v1569_v3 = vmul.f32 %v5517_v9, %v5380_v24 }
 0x317   : > { %4159 = vmatprep.subr.bf16.mxu0 %v4158_v12  ;;  %v1565_v1 = vmul.f32 %v5525_v36, %v5359_v18  ;;  %v1562_v41 = vmul.f32 %v5525_v36, %v5342_v11  ;;  %v1568_v45 = vmul.f32 %v5525_v36, %v5378_v23  ;;  %v1561_v54 = vmul.f32 %v5519_v10, %v5354_v16 }
 0x318   : > { %4161 = vmatpush1.bf16.msra.mxu0 %v4160_v15  ;;  %v1564_v55 = vmul.f32 %v5519_v10, %v5356_v17  ;;  %v1567_v62 = vmul.f32 %v5519_v10, %v5392_v28  ;;  %v1570_v6 = vmul.f32 %v5519_v10, %v5394_v29  ;;  %v1571_v15 = vmul.f32 %v5525_v36, %v5397_v30 }
 0x319   : > { %v4528_v49 = vpop.permute.xlu1 %4527  ;;  %v4523_v50 = vpop.permute.xlu0 %4522  ;;  %4163 = vmatprep.subr.bf16.mxu0 %v4162_v19  ;;  %v4616_v51 = vpack.i.bf16 %v1566_v37, %v1565_v1  ;;  %v4611_v53 = vpack.i.bf16 %v1563_v38, %v1562_v41  ;;  %v4626_v12 = vpack.i.bf16 %v1569_v3, %v1568_v45  ;;  %v1572_v19 = vmul.f32 %v5517_v9, %v5403_v32  ;;  %v4002_v41 = vld [vmem:[%s6450_s5 + $0x30] sm:$0xff] }
 0x31a   : > { %v4530_v56 = vunpack.i.h.bf16 %v4528_v49  ;;  %v4529_v57 = vunpack.i.l.bf16 %v4528_v49  ;;  %v4525_v58 = vunpack.i.h.bf16 %v4523_v50  ;;  %v4524_v59 = vunpack.i.l.bf16 %v4523_v50 }
 0x31b   : > { %4617 = vrot.lane.b32.xlu1 %v4616_v51, %s5090_s26  ;;  %4004 = vmatmul.mubr.msk.f32.vlgmr.msra.gmra.mrb[4].mxu0 %vm448_vm0, %v4000_v44  ;;  %v4621_v35 = vpack.i.bf16 %v1564_v55, %v1561_v54  ;;  %v4168_v37 = vpack.c.bf16 %v742_v46, %v740_v61  ;;  %v4636_v44 = vpack.i.bf16 %v1570_v6, %v1567_v62  ;;  %v4003_v61 = vld [vmem:[%s6450_s5 + $0x38] sm:$0xff] }
 0x31c   : > { %4612 = vrot.lane.b32.xlu0 %v4611_v53, %s5090_s26  ;;  %4165 = vmatpush1.bf16.msra.mxu0 %v4164_v42  ;;  %v1085_v0 = vsel %vm1083_vm9, %v4524_v59, %v4525_v58  ;;  %v1087_v2 = vsel %vm1083_vm9, %v4529_v57, %v4530_v56  ;;  %v4631_v45 = vpack.i.bf16 %v1572_v19, %v1571_v15 }
 0x31d   : > { %v5566_v7 = vpop.permute.xlu1 %1740  ;;  %v4533_v8 = vpop.permute.xlu0 %4532  ;;  %4167 = vmatprep.subr.bf16.mxu0 %v4166_v60  ;;  %892 = vmatprep.mubr.f32.mxu0 %v6458_v39  ;;  %v4170_v38 = vpack.c.bf16 %v1087_v2, %v1085_v0 }
 0x31e   : > { %v4535_v40 = vunpack.i.h.bf16 %v4533_v8  ;;  %v4534_v1 = vunpack.i.l.bf16 %v4533_v8  ;;  %v1748_v49 = vmul.f32 %v5566_v7, %v5354_v16  ;;  %v1751_v50 = vmul.f32 %v5566_v7, %v5356_v17 }
 0x31f   : > { %4627 = vrot.lane.b32.xlu1 %v4626_v12, %s5090_s26  ;;  %4005 = vmatmul.mubr.msk.f32.gmra.mrb[6].mxu0 %vm448_vm0, %v4001_v63  ;;  %v1754_v12 = vmul.f32 %v5566_v7, %v5392_v28 }
 0x320   : > { %4622 = vrot.lane.b32.xlu0 %v4621_v35, %s5090_s26  ;;  %4169 = vmatpush1.bf16.msra.mxu0 %v4168_v37  ;;  %v1086_v55 = vsel %vm1083_vm9, %v4535_v40, %v4529_v57  ;;  %v1084_v56 = vsel %vm1083_vm9, %v4534_v1, %v4524_v59  ;;  %v4651_v35 = vpack.i.bf16 %v1751_v50, %v1748_v49 }
 0x321   : > { %v4538_v42 = vpop.permute.xlu1 %4537  ;;  %v5579_v43 = vpop.permute.xlu0 %1742  ;;  %4171 = vmatprep.subr.bf16.mxu0 %v4170_v38  ;;  %898 = vmatprep.mubr.f32.mxu0 %v6458_v39  ;;  %v1757_v37 = vmul.f32 %v5566_v7, %v5394_v29  ;;  %v744_v38 = vld [vmem:[%s6450_s5] sm:$0xff]  ;;  %v4172_v40 = vpack.c.bf16 %v1086_v55, %v1084_v56 }
 0x322   : > { %v5585_v3 = vsel %vm448_vm0, %v5566_v7, %v5579_v43  ;;  %v1753_v46 = vmul.f32 %v5579_v43, %v5362_v20  ;;  %v1750_v54 = vmul.f32 %v5579_v43, %v5345_v13  ;;  %v4540_v58 = vunpack.i.h.bf16 %v4538_v42 }
 0x323   : > { %4637 = vrot.lane.b32.xlu1 %v4636_v44, %s5090_s26  ;;  %4006 = vmatmul.mubr.msk.f32.gmra.mrb[8].mxu0 %vm448_vm0, %v4002_v41  ;;  %v1752_v51 = vmul.f32 %v5585_v3, %v5359_v18  ;;  %v1749_v53 = vmul.f32 %v5585_v3, %v5342_v11  ;;  %v4539_v60 = vunpack.i.l.bf16 %v4538_v42  ;;  %v1755_v6 = vmul.f32 %v5585_v3, %v5378_v23 }
 0x324   : > { %4632 = vrot.lane.b32.xlu0 %v4631_v45, %s5090_s26  ;;  %904 = vmatprep.mubr.f32.mxu0 %v6458_v39  ;;  %v1756_v57 = vmul.f32 %v5579_v43, %v5380_v24  ;;  %v1758_v49 = vmul.f32 %v5585_v3, %v5397_v30  ;;  %v1759_v50 = vmul.f32 %v5579_v43, %v5403_v32 }
 0x325   : > { %v4548_v62 = vpop.permute.xlu1 %4547  ;;  %v4543_v63 = vpop.permute.xlu0 %4542  ;;  %v4646_v0 = vpack.i.bf16 %v1753_v46, %v1752_v51  ;;  %v4641_v2 = vpack.i.bf16 %v1750_v54, %v1749_v53  ;;  %v1089_v1 = vsel %vm1083_vm9, %v4539_v60, %v4540_v58  ;;  %v745_v58 = vld [vmem:[%s6450_s5 + $0x8] sm:$0xff] }
 0x326   : > { %v4545_v59 = vunpack.i.h.bf16 %v4543_v63  ;;  %v4544_v8 = vunpack.i.l.bf16 %v4543_v63  ;;  %v4550_v15 = vunpack.i.h.bf16 %v4548_v62  ;;  %v4549_v19 = vunpack.i.l.bf16 %v4548_v62 }
 0x327   : > { %4007 = vmatmul.mubr.msk.f32.gmra.mrb[10].mxu0 %vm448_vm0, %v4003_v61  ;;  %4647 = vrot.lane.b32.xlu1 %v4646_v0, %s5091_s17  ;;  %v4656_v45 = vpack.i.bf16 %v1756_v57, %v1755_v6  ;;  %v4661_v57 = vpack.i.bf16 %v1759_v50, %v1758_v49 }
 0x328   : > { %4642 = vrot.lane.b32.xlu0 %v4641_v2, %s5091_s17  ;;  %987 = vmatprep.mubr.f32.mxu0 %v6458_v39  ;;  %v1091_v41 = vsel %vm1083_vm9, %v4544_v8, %v4545_v59  ;;  %v1088_v55 = vsel %vm1083_vm9, %v4549_v19, %v4539_v60  ;;  %v1090_v56 = vsel %vm1083_vm9, %v4550_v15, %v4544_v8  ;;  %v746_v8 = vld [vmem:[%s6450_s5 + $0x10] sm:$0xff] }
 0x329   : > { %v4558_v42 = vpop.permute.xlu1 %4557  ;;  %v4553_v44 = vpop.permute.xlu0 %4552  ;;  %v4174_v46 = vpack.c.bf16 %v1091_v41, %v1089_v1  ;;  %v4666_v2 = vpack.i.bf16 %v1757_v37, %v1754_v12  ;;  %v4176_v59 = vpack.c.bf16 %v1090_v56, %v1088_v55 }
 0x32a   : > { %v4560_v51 = vunpack.i.h.bf16 %v4558_v42  ;;  %v4559_v53 = vunpack.i.l.bf16 %v4558_v42  ;;  %v4555_v54 = vunpack.i.h.bf16 %v4553_v44  ;;  %v4554_v61 = vunpack.i.l.bf16 %v4553_v44 }
 0x32b   : > { %4657 = vrot.lane.b32.xlu1 %v4656_v45, %s5091_s17  ;;  %4008 = vmatmul.mubr.msk.f32.vlgmr.msra.gmra.mrb[4].mxu0 %vm448_vm0, %v744_v38 }
 0x32c   : > { %4652 = vrot.lane.b32.xlu0 %v4651_v35, %s5091_s17  ;;  %4173 = vmatpush1.bf16.msra.mxu0 %v4172_v40  ;;  %v1273_v62 = vsel %vm1271_vm10, %v4554_v61, %v4555_v54  ;;  %v1275_v63 = vsel %vm1271_vm10, %v4559_v53, %v4560_v51  ;;  %v747_v40 = vld [vmem:[%s6450_s5 + $0x18] sm:$0xff] }
 0x32d   : > { %4175 = vmatprep.subr.bf16.mxu0 %v4174_v46  ;;  %v4568_v0 = vpop.permute.xlu1 %4567  ;;  %v4563_v60 = vpop.permute.xlu0 %4562  ;;  %993 = vmatprep.mubr.f32.mxu0 %v6458_v39  ;;  %v4178_v6 = vpack.c.bf16 %v1275_v63, %v1273_v62 }
 0x32e   : > { %v4565_v12 = vunpack.i.h.bf16 %v4563_v60  ;;  %v4564_v35 = vunpack.i.l.bf16 %v4563_v60  ;;  %v4570_v42 = vunpack.i.h.bf16 %v4568_v0  ;;  %v4569_v44 = vunpack.i.l.bf16 %v4568_v0  ;;  %v4013_v0 = vld [vmem:[%s6450_s5 + $0x48] sm:$0xff] }
 0x32f   : > { %4667 = vrot.lane.b32.xlu1 %v4666_v2, %s5091_s17  ;;  %4009 = vmatmul.mubr.msk.f32.gmra.mrb[6].mxu0 %vm448_vm0, %v745_v58 }
 0x330   : > { %4662 = vrot.lane.b32.xlu0 %v4661_v57, %s5091_s17  ;;  %4177 = vmatpush1.bf16.msra.mxu0 %v4176_v59  ;;  %v1274_v45 = vsel %vm1271_vm10, %v4565_v12, %v4559_v53  ;;  %v1277_v58 = vsel %vm1271_vm10, %v4569_v44, %v4570_v42 }
 0x331   : > { %4179 = vmatprep.subr.bf16.mxu0 %v4178_v6  ;;  %v4573_v15 = vpop.permute.xlu1 %4572  ;;  %v4578_v19 = vpop.permute.xlu0 %4577  ;;  %999 = vmatprep.mubr.f32.mxu0 %v6458_v39 }
 0x332   : > { %v4580_v37 = vunpack.i.h.bf16 %v4578_v19  ;;  %v4579_v38 = vunpack.i.l.bf16 %v4578_v19  ;;  %v4575_v46 = vunpack.i.h.bf16 %v4573_v15  ;;  %v4574_v49 = vunpack.i.l.bf16 %v4573_v15 }
 0x333   : > { %4677 = vrot.lane.b32.xlu1 %v5371_v22, %s5092_s30  ;;  %4010 = vmatmul.mubr.msk.f32.gmra.mrb[8].mxu0 %vm448_vm0, %v746_v8  ;;  %v1272_v22 = vsel %vm1271_vm10, %v4564_v35, %v4554_v61 }
 0x334   : > { %4672 = vrot.lane.b32.xlu0 %v5350_v14, %s5092_s30  ;;  %1005 = vmatprep.mubr.f32.mxu0 %v6458_v39  ;;  %v1279_v14 = vsel %vm1271_vm10, %v4579_v38, %v4580_v37  ;;  %v4180_v56 = vpack.c.bf16 %v1274_v45, %v1272_v22  ;;  %v1276_v62 = vsel %vm1271_vm10, %v4574_v49, %v4569_v44 }
 0x335   : > { %v5656_v1 = vpop.permute.xlu1 %4587  ;;  %v5658_v41 = vpop.permute.xlu0 %4582  ;;  %v1278_v63 = vsel %vm1271_vm10, %v4575_v46, %v4579_v38 }
 0x336   : > { %v4590_v50 = vunpack.i.h.bf16 %v5656_v1  ;;  %v4589_v51 = vunpack.i.l.bf16 %v5656_v1  ;;  %v4585_v54 = vunpack.i.h.bf16 %v5658_v41  ;;  %v4584_v55 = vunpack.i.l.bf16 %v5658_v41 }
 0x337   : > { %4687 = vrot.lane.b32.xlu1 %v5384_v25, %s5092_s30  ;;  %4011 = vmatmul.mubr.msk.f32.gmra.mrb[10].mxu0 %vm448_vm0, %v747_v40  ;;  %v4012_v25 = vld [vmem:[%s6450_s5 + $0x40] sm:$0xff]  ;;  %v4184_v6 = vpack.c.bf16 %v1278_v63, %v1276_v62 }
 0x338   : > { %4682 = vrot.lane.b32.xlu0 %v5366_v21, %s5092_s30  ;;  %1176 = vmatprep.mubr.f32.mxu0 %v6458_v39  ;;  %v4182_v21 = vpack.c.bf16 %v1279_v14, %v1277_v58  ;;  %v1428_v60 = vsel %vm1426_vm11, %v4584_v55, %v4585_v54  ;;  %v4015_v14 = vld [vmem:[%s6450_s5 + $0x58] sm:$0xff]  ;;  %v4020_v58 = vld [vmem:[%s6450_s5 + $0x60] sm:$0xff] }
 0x339   : > { %v5676_v53 = vpop.permute.xlu1 %2082  ;;  %v4593_v61 = vpop.permute.xlu0 %4592 }
 0x33a   : > { %v2091_v35 = vmul.f32 %v5676_v53, %v5354_v16  ;;  %v4595_v42 = vunpack.i.h.bf16 %v4593_v61  ;;  %v4594_v44 = vunpack.i.l.bf16 %v4593_v61 }
 0x33b   : > { %4697 = vrot.lane.b32.xlu1 %v5401_v31, %s5092_s30  ;;  %4016 = vmatmul.mubr.msk.f32.vlgmr.msra.gmra.mrb[4].mxu0 %vm448_vm0, %v4012_v25  ;;  %v1430_v31 = vsel %vm1426_vm11, %v4589_v51, %v4590_v50 }
 0x33c   : > { %4692 = vrot.lane.b32.xlu0 %v5407_v33, %s5092_s30  ;;  %4181 = vmatpush1.bf16.msra.mxu0 %v4180_v56  ;;  %v4186_v8 = vpack.c.bf16 %v1430_v31, %v1428_v60  ;;  %v4021_v60 = vld [vmem:[%s6450_s5 + $0x68] sm:$0xff] }
 0x33d   : > { %4183 = vmatprep.subr.bf16.mxu0 %v4182_v21  ;;  %v5695_v2 = vpop.permute.xlu0 %2084  ;;  %1182 = vmatprep.mubr.f32.mxu0 %v6458_v39  ;;  %v4598_v59 = vpop.permute.xlu1 %4597  ;;  %v2271_v21 = vld [vmem:[%s6453_s8 + $0x8] sm:$0xff] }
 0x33e   : > { %v5700_v33 = vsel %vm2086_vm12, %v5676_v53, %v5695_v2  ;;  %v2096_v57 = vmul.f32 %v5695_v2, %v5362_v20  ;;  %v2093_v12 = vmul.f32 %v5695_v2, %v5345_v13  ;;  %v2094_v20 = vmul.f32 %v5676_v53, %v5356_v17 }
 0x33f   : > { %4017 = vmatmul.mubr.msk.f32.gmra.mrb[6].mxu0 %vm448_vm0, %v4013_v0  ;;  %v2095_v15 = vmul.f32 %v5700_v33, %v5359_v18  ;;  %v2092_v19 = vmul.f32 %v5700_v33, %v5342_v11  ;;  %v4014_v18 = vld [vmem:[%s6450_s5 + $0x50] sm:$0xff]  ;;  %v2098_v11 = vmul.f32 %v5700_v33, %v5378_v23  ;;  %v2099_v13 = vmul.f32 %v5695_v2, %v5380_v24  ;;  %v2270_v0 = vld [vmem:[%s6453_s8] sm:$0xff] }
 0x340   : > { %4185 = vmatpush1.bf16.msra.mxu0 %v4184_v6  ;;  %1188 = vmatprep.mubr.f32.mxu0 %v6458_v39  ;;  %v4711_v16 = vpack.i.bf16 %v2094_v20, %v2091_v35  ;;  %v2097_v17 = vmul.f32 %v5676_v53, %v5392_v28  ;;  %v2100_v23 = vmul.f32 %v5676_v53, %v5394_v29  ;;  %v4600_v28 = vunpack.i.h.bf16 %v4598_v59  ;;  %v2273_v6 = vld [vmem:[%s6453_s8 + $0x18] sm:$0xff] }
 0x341   : > { %4187 = vmatprep.subr.bf16.mxu0 %v4186_v8  ;;  %v4706_v37 = vpack.i.bf16 %v2096_v57, %v2095_v15  ;;  %v4701_v38 = vpack.i.bf16 %v2093_v12, %v2092_v19  ;;  %v4603_v40 = vpop.permute.xlu0 %4602  ;;  %v2101_v24 = vmul.f32 %v5700_v33, %v5397_v30  ;;  %v4608_v45 = vpop.permute.xlu1 %4607  ;;  %v4716_v49 = vpack.i.bf16 %v2099_v13, %v2098_v11  ;;  %v2272_v57 = vld [vmem:[%s6453_s8 + $0x10] sm:$0xff]  ;;  %v4023_v8 = vld [vmem:[%s6450_s5 + $0x78] sm:$0xff]  ;;  %v4028_v15 = vld [vmem:[%s6450_s5 + $0x80] sm:$0xff] }
 0x342   : > { %v4605_v22 = vunpack.i.h.bf16 %v4603_v40  ;;  %v4604_v46 = vunpack.i.l.bf16 %v4603_v40  ;;  %v2102_v50 = vmul.f32 %v5695_v2, %v5403_v32  ;;  %v4599_v54 = vunpack.i.l.bf16 %v4598_v59  ;;  %v4022_v59 = vld [vmem:[%s6450_s5 + $0x70] sm:$0xff]  ;;  %v4029_v19 = vld [vmem:[%s6450_s5 + $0x88] sm:$0xff]  ;;  %v4031_v35 = vld [vmem:[%s6450_s5 + $0x98] sm:$0xff] }
 0x343   : > { %4707 = vrot.lane.b32.xlu1 %v4706_v37, %s5093_s25  ;;  %4702 = vrot.lane.b32.xlu0 %v4701_v38, %s5093_s25  ;;  %v1429_v29 = vsel %vm1426_vm11, %v4595_v42, %v4589_v51  ;;  %v1427_v30 = vsel %vm1426_vm11, %v4594_v44, %v4584_v55  ;;  %v4610_v25 = vunpack.i.h.bf16 %v4608_v45  ;;  %v4609_v61 = vunpack.i.l.bf16 %v4608_v45  ;;  %v4030_v12 = vld [vmem:[%s6450_s5 + $0x90] sm:$0xff] }
 0x344   : > { %4018 = vmatmul.mubr.msk.f32.gmra.mrb[8].mxu0 %vm448_vm0, %v4014_v18  ;;  %v4726_v32 = vpack.i.bf16 %v2100_v23, %v2097_v17  ;;  %v4721_v56 = vpack.i.bf16 %v2102_v50, %v2101_v24  ;;  %v1434_v1 = vsel %vm1426_vm11, %v4604_v46, %v4605_v22  ;;  %v4188_v62 = vpack.c.bf16 %v1429_v29, %v1427_v30 }
 0x345   : > { %1194 = vmatprep.mubr.f32.mxu0 %v6458_v39  ;;  %v1432_v41 = vsel %vm1426_vm11, %v4599_v54, %v4600_v28  ;;  %v1431_v51 = vsel %vm1426_vm11, %v4609_v61, %v4599_v54  ;;  %v1433_v55 = vsel %vm1426_vm11, %v4610_v25, %v4604_v46 }
 0x346   : > { %v4190_v63 = vpack.c.bf16 %v1434_v1, %v1432_v41  ;;  %v4192_v31 = vpack.c.bf16 %v1433_v55, %v1431_v51 }
 0x347   : > { %4717 = vrot.lane.b32.xlu1 %v4716_v49, %s5093_s25  ;;  %4712 = vrot.lane.b32.xlu0 %v4711_v16, %s5093_s25 }
 0x348   : > { %4019 = vmatmul.mubr.msk.f32.gmra.mrb[10].mxu0 %vm448_vm0, %v4015_v14 }
 0x349   : > { %1364 = vmatprep.mubr.f32.mxu0 %v6458_v39 }
 0x34b   : > { %4727 = vrot.lane.b32.xlu1 %v4726_v32, %s5093_s25  ;;  %4722 = vrot.lane.b32.xlu0 %v4721_v56, %s5093_s25 }
 0x34c   : > { %4024 = vmatmul.mubr.msk.f32.vlgmr.msra.gmra.mrb[4].mxu0 %vm448_vm0, %v4020_v58 }
 0x34d   : > { %4189 = vmatpush1.bf16.msra.mxu0 %v4188_v62  ;;  %1370 = vmatprep.mubr.f32.mxu0 %v6458_v39 }
 0x34e   : > { %4191 = vmatprep.subr.bf16.mxu0 %v4190_v63 }
 0x34f   : > { %2281 = vperm.xlu1 %4490, %v2271_v21   ;;  %2276 = vperm.xlu0 %4489, %v2270_v0  }
 0x350   : > { %4025 = vmatmul.mubr.msk.f32.gmra.mrb[6].mxu0 %vm448_vm0, %v4021_v60 }
 0x351   : > { %4193 = vmatpush1.bf16.msra.mxu0 %v4192_v31  ;;  %1376 = vmatprep.mubr.f32.mxu0 %v6458_v39 }
 0x353   : > { %2291 = vperm.xlu1 %4490, %v2273_v6   ;;  %2286 = vperm.xlu0 %4489, %v2272_v57   ;;  %v4036_v6 = vld [vmem:[%s6450_s5 + $0xa0] sm:$0xff] }
 0x354   : > { %4026 = vmatmul.mubr.msk.f32.gmra.mrb[8].mxu0 %vm448_vm0, %v4022_v59 }
 0x355   : > { %1382 = vmatprep.mubr.f32.mxu0 %v6458_v39 }
 0x358   : > { %4027 = vmatmul.mubr.msk.f32.gmra.mrb[10].mxu0 %vm448_vm0, %v4023_v8 }
 0x359   : > { %1519 = vmatprep.mubr.f32.mxu0 %v6458_v39 }
 0x35c   : > { %4032 = vmatmul.mubr.msk.f32.vlgmr.msra.gmra.mrb[4].mxu0 %vm448_vm0, %v4028_v15 }
 0x35d   : > { %1525 = vmatprep.mubr.f32.mxu0 %v6458_v39 }
 0x360   : > { %4033 = vmatmul.mubr.msk.f32.gmra.mrb[6].mxu0 %vm448_vm0, %v4029_v19 }
 0x361   : > { %1531 = vmatprep.mubr.f32.mxu0 %v6458_v39 }
 0x364   : > { %4034 = vmatmul.mubr.msk.f32.gmra.mrb[8].mxu0 %vm448_vm0, %v4030_v12 }
 0x365   : > { %1537 = vmatprep.mubr.f32.mxu0 %v6458_v39 }
 0x368   : > { %4035 = vmatmul.mubr.msk.f32.gmra.mrb[10].mxu0 %vm448_vm0, %v4031_v35 }
 0x369   : > { %1707 = vmatprep.mubr.f32.mxu0 %v6458_v39 }
 0x38d   : > { %v4618_v20 = vpop.permute.xlu1 %4617 }
 0x38e   : > { %v4620_v37 = vunpack.i.h.bf16 %v4618_v20  ;;  %v4619_v38 = vunpack.i.l.bf16 %v4618_v20  ;;  %v4613_v18 = vpop.permute.xlu0 %4612 }
 0x38f   : > { %v4615_v11 = vunpack.i.h.bf16 %v4613_v18  ;;  %v4614_v13 = vunpack.i.l.bf16 %v4613_v18  ;;  %v4037_v18 = vld [vmem:[%s6450_s5 + $0xa8] sm:$0xff] }
 0x390   : > { %v1618_v40 = vsel %vm1614_vm13, %v4619_v38, %v4620_v37 }
 0x391   : > { %v4628_v42 = vpop.permute.xlu1 %4627  ;;  %v1616_v44 = vsel %vm1614_vm13, %v4614_v13, %v4615_v11 }
 0x392   : > { %v4623_v16 = vpop.permute.xlu0 %4622  ;;  %v4194_v17 = vpack.c.bf16 %v1618_v40, %v1616_v44  ;;  %v4630_v45 = vunpack.i.h.bf16 %v4628_v42  ;;  %v4629_v22 = vunpack.i.l.bf16 %v4628_v42 }
 0x393   : > { %v4625_v23 = vunpack.i.h.bf16 %v4623_v16  ;;  %v4624_v24 = vunpack.i.l.bf16 %v4623_v16 }
 0x394   : > { %4195 = vmatprep.subr.bf16.mxu0 %v4194_v17  ;;  %v1620_v58 = vsel %vm1614_vm13, %v4629_v22, %v4630_v45  ;;  %v4038_v45 = vld [vmem:[%s6450_s5 + $0xb0] sm:$0xff] }
 0x395   : > { %v1617_v46 = vsel %vm1614_vm13, %v4625_v23, %v4619_v38  ;;  %v1615_v49 = vsel %vm1614_vm13, %v4624_v24, %v4614_v13  ;;  %v4638_v14 = vpop.permute.xlu1 %4637 }
 0x396   : > { %v4196_v50 = vpack.c.bf16 %v1617_v46, %v1615_v49  ;;  %v4640_v28 = vunpack.i.h.bf16 %v4638_v14  ;;  %v4639_v54 = vunpack.i.l.bf16 %v4638_v14  ;;  %v4633_v29 = vpop.permute.xlu0 %4632 }
 0x397   : > { %v4635_v30 = vunpack.i.h.bf16 %v4633_v29  ;;  %v4634_v25 = vunpack.i.l.bf16 %v4633_v29 }
 0x398   : > { %v1619_v61 = vsel %vm1614_vm13, %v4639_v54, %v4629_v22  ;;  %4197 = vmatpush1.bf16.msra.mxu0 %v4196_v50 }
 0x399   : > { %v1621_v32 = vsel %vm1614_vm13, %v4640_v28, %v4634_v25  ;;  %v4648_v56 = vpop.permute.xlu1 %4647  ;;  %v1622_v1 = vsel %vm1614_vm13, %v4634_v25, %v4635_v30 }
 0x39a   : > { %v4200_v62 = vpack.c.bf16 %v1621_v32, %v1619_v61  ;;  %v4650_v41 = vunpack.i.h.bf16 %v4648_v56  ;;  %v4649_v51 = vunpack.i.l.bf16 %v4648_v56  ;;  %v4643_v55 = vpop.permute.xlu0 %4642  ;;  %v4198_v63 = vpack.c.bf16 %v1622_v1, %v1620_v58  ;;  %v4039_v32 = vld [vmem:[%s6450_s5 + $0xb8] sm:$0xff] }
 0x39b   : > { %v4645_v21 = vunpack.i.h.bf16 %v4643_v55  ;;  %v4644_v0 = vunpack.i.l.bf16 %v4643_v55 }
 0x39c   : > { %4199 = vmatprep.subr.bf16.mxu0 %v4198_v63  ;;  %v1805_v60 = vsel %vm1801_vm14, %v4649_v51, %v4650_v41 }
 0x39d   : > { %4201 = vmatpush1.bf16.msra.mxu0 %v4200_v62  ;;  %v4658_v31 = vpop.permute.xlu1 %4657  ;;  %v1803_v57 = vsel %vm1801_vm14, %v4644_v0, %v4645_v21 }
 0x39e   : > { %v4653_v59 = vpop.permute.xlu0 %4652  ;;  %v4202_v8 = vpack.c.bf16 %v1805_v60, %v1803_v57  ;;  %v4660_v12 = vunpack.i.h.bf16 %v4658_v31  ;;  %v4659_v35 = vunpack.i.l.bf16 %v4658_v31  ;;  %v4044_v60 = vld [vmem:[%s6450_s5 + $0xc0] sm:$0xff] }
 0x39f   : > { %v4655_v15 = vunpack.i.h.bf16 %v4653_v59  ;;  %v4654_v19 = vunpack.i.l.bf16 %v4653_v59 }
 0x3a0   : > { %4040 = vmatmul.mubr.msk.f32.vlgmr.msra.gmra.mrb[4].mxu0 %vm448_vm0, %v4036_v6  ;;  %4203 = vmatprep.subr.bf16.mxu0 %v4202_v8  ;;  %v1807_v22 = vsel %vm1801_vm14, %v4659_v35, %v4660_v12 }
 0x3a1   : > { %v1804_v20 = vsel %vm1801_vm14, %v4655_v15, %v4649_v51  ;;  %v1802_v37 = vsel %vm1801_vm14, %v4654_v19, %v4644_v0  ;;  %v4668_v38 = vpop.permute.xlu1 %4667  ;;  %1713 = vmatprep.mubr.f32.mxu0 %v6458_v39 }
 0x3a2   : > { %v4204_v11 = vpack.c.bf16 %v1804_v20, %v1802_v37  ;;  %v4670_v13 = vunpack.i.h.bf16 %v4668_v38  ;;  %v4669_v40 = vunpack.i.l.bf16 %v4668_v38  ;;  %v4663_v42 = vpop.permute.xlu0 %4662 }
 0x3a3   : > { %v4665_v44 = vunpack.i.h.bf16 %v4663_v42  ;;  %v4664_v16 = vunpack.i.l.bf16 %v4663_v42 }
 0x3a4   : > { %v1806_v17 = vsel %vm1801_vm14, %v4669_v40, %v4659_v35  ;;  %4041 = vmatmul.mubr.msk.f32.gmra.mrb[6].mxu0 %vm448_vm0, %v4037_v18  ;;  %v4045_v35 = vld [vmem:[%s6450_s5 + $0xc8] sm:$0xff]  ;;  %v4046_v40 = vld [vmem:[%s6450_s5 + $0xd0] sm:$0xff] }
 0x3a5   : > { %v1808_v23 = vsel %vm1801_vm14, %v4670_v13, %v4664_v16  ;;  %4205 = vmatpush1.bf16.msra.mxu0 %v4204_v11  ;;  %v4678_v24 = vpop.permute.xlu1 %4677  ;;  %1719 = vmatprep.mubr.f32.mxu0 %v6458_v39  ;;  %v1809_v46 = vsel %vm1801_vm14, %v4664_v16, %v4665_v44 }
 0x3a6   : > { %v4208_v49 = vpack.c.bf16 %v1808_v23, %v1806_v17  ;;  %v4680_v14 = vunpack.i.h.bf16 %v4678_v24  ;;  %v4679_v50 = vunpack.i.l.bf16 %v4678_v24  ;;  %v4673_v28 = vpop.permute.xlu0 %4672  ;;  %v4206_v54 = vpack.c.bf16 %v1809_v46, %v1807_v22  ;;  %v4047_v46 = vld [vmem:[%s6450_s5 + $0xd8] sm:$0xff] }
 0x3a7   : > { %v4675_v29 = vunpack.i.h.bf16 %v4673_v28  ;;  %v4674_v30 = vunpack.i.l.bf16 %v4673_v28 }
 0x3a8   : > { %4042 = vmatmul.mubr.msk.f32.gmra.mrb[8].mxu0 %vm448_vm0, %v4038_v45  ;;  %4207 = vmatprep.subr.bf16.mxu0 %v4206_v54  ;;  %v1960_v25 = vsel %vm1956_vm15, %v4679_v50, %v4680_v14 }
 0x3a9   : > { %4209 = vmatpush1.bf16.msra.mxu0 %v4208_v49  ;;  %v4688_v61 = vpop.permute.xlu1 %4687  ;;  %1725 = vmatprep.mubr.f32.mxu0 %v6458_v39  ;;  %v1958_v56 = vsel %vm1956_vm15, %v4674_v30, %v4675_v29 }
 0x3aa   : > { %v4683_v58 = vpop.permute.xlu0 %4682  ;;  %v4210_v1 = vpack.c.bf16 %v1960_v25, %v1958_v56  ;;  %v4690_v51 = vunpack.i.h.bf16 %v4688_v61  ;;  %v4689_v55 = vunpack.i.l.bf16 %v4688_v61  ;;  %v4052_v56 = vld [vmem:[%s6450_s5 + $0xe0] sm:$0xff] }
 0x3ab   : > { %v4685_v62 = vunpack.i.h.bf16 %v4683_v58  ;;  %v4684_v41 = vunpack.i.l.bf16 %v4683_v58 }
 0x3ac   : > { %4043 = vmatmul.mubr.msk.f32.gmra.mrb[10].mxu0 %vm448_vm0, %v4039_v32  ;;  %4211 = vmatprep.subr.bf16.mxu0 %v4210_v1  ;;  %v1962_v20 = vsel %vm1956_vm15, %v4689_v55, %v4690_v51 }
 0x3ad   : > { %v1959_v63 = vsel %vm1956_vm15, %v4685_v62, %v4679_v50  ;;  %v1957_v21 = vsel %vm1956_vm15, %v4684_v41, %v4674_v30  ;;  %v4698_v0 = vpop.permute.xlu1 %4697  ;;  %1894 = vmatprep.mubr.f32.mxu0 %v6458_v39 }
 0x3ae   : > { %v4212_v31 = vpack.c.bf16 %v1959_v63, %v1957_v21  ;;  %v4700_v6 = vunpack.i.h.bf16 %v4698_v0  ;;  %v4699_v57 = vunpack.i.l.bf16 %v4698_v0  ;;  %v4693_v59 = vpop.permute.xlu0 %4692 }
 0x3af   : > { %v4695_v8 = vunpack.i.h.bf16 %v4693_v59  ;;  %v4694_v15 = vunpack.i.l.bf16 %v4693_v59  ;;  %v4060_v59 = vld [vmem:[%s6450_s5 + $0x100] sm:$0xff] }
 0x3b0   : > { %v1961_v19 = vsel %vm1956_vm15, %v4699_v57, %v4689_v55  ;;  %4048 = vmatmul.mubr.msk.f32.vlgmr.msra.gmra.mrb[4].mxu0 %vm448_vm0, %v4044_v60  ;;  %v4053_v60 = vld [vmem:[%s6450_s5 + $0xe8] sm:$0xff]  ;;  %v4055_v57 = vld [vmem:[%s6450_s5 + $0xf8] sm:$0xff] }
 0x3b1   : > { %v1963_v12 = vsel %vm1956_vm15, %v4700_v6, %v4694_v15  ;;  %4213 = vmatpush1.bf16.msra.mxu0 %v4212_v31  ;;  %1900 = vmatprep.mubr.f32.mxu0 %v6458_v39  ;;  %v1964_v37 = vsel %vm1956_vm15, %v4694_v15, %v4695_v8  ;;  %v4054_v6 = vld [vmem:[%s6450_s5 + $0xf0] sm:$0xff]  ;;  %v4061_v8 = vld [vmem:[%s6450_s5 + $0x108] sm:$0xff] }
 0x3b2   : > { %v4216_v38 = vpack.c.bf16 %v1963_v12, %v1961_v19  ;;  %v4214_v18 = vpack.c.bf16 %v1964_v37, %v1962_v20  ;;  %v4062_v15 = vld [vmem:[%s6450_s5 + $0x110] sm:$0xff]  ;;  %v4063_v19 = vld [vmem:[%s6450_s5 + $0x118] sm:$0xff] }
 0x3b4   : > { %4049 = vmatmul.mubr.msk.f32.gmra.mrb[6].mxu0 %vm448_vm0, %v4045_v35  ;;  %4215 = vmatprep.subr.bf16.mxu0 %v4214_v18 }
 0x3b5   : > { %4217 = vmatpush1.bf16.msra.mxu0 %v4216_v38  ;;  %v4708_v11 = vpop.permute.xlu1 %4707  ;;  %v4703_v13 = vpop.permute.xlu0 %4702  ;;  %1906 = vmatprep.mubr.f32.mxu0 %v6458_v39 }
 0x3b6   : > { %v4710_v42 = vunpack.i.h.bf16 %v4708_v11  ;;  %v4709_v44 = vunpack.i.l.bf16 %v4708_v11  ;;  %v4705_v16 = vunpack.i.h.bf16 %v4703_v13  ;;  %v4704_v17 = vunpack.i.l.bf16 %v4703_v13 }
 0x3b8   : > { %4050 = vmatmul.mubr.msk.f32.gmra.mrb[8].mxu0 %vm448_vm0, %v4046_v40  ;;  %v2146_v23 = vsel %vm2144_vm1, %v4704_v17, %v4705_v16  ;;  %v2148_v24 = vsel %vm2144_vm1, %v4709_v44, %v4710_v42 }
 0x3b9   : > { %v4718_v45 = vpop.permute.xlu1 %4717  ;;  %v4713_v22 = vpop.permute.xlu0 %4712  ;;  %1912 = vmatprep.mubr.f32.mxu0 %v6458_v39  ;;  %v4218_v49 = vpack.c.bf16 %v2148_v24, %v2146_v23 }
 0x3ba   : > { %v4715_v14 = vunpack.i.h.bf16 %v4713_v22  ;;  %v4714_v50 = vunpack.i.l.bf16 %v4713_v22  ;;  %v4720_v28 = vunpack.i.h.bf16 %v4718_v45  ;;  %v4719_v54 = vunpack.i.l.bf16 %v4718_v45 }
 0x3bb   : > { %4219 = vmatprep.subr.bf16.mxu0 %v4218_v49 }
 0x3bc   : > { %v2147_v29 = vsel %vm2144_vm1, %v4715_v14, %v4709_v44  ;;  %v2145_v30 = vsel %vm2144_vm1, %v4714_v50, %v4704_v17  ;;  %4051 = vmatmul.mubr.msk.f32.gmra.mrb[10].mxu0 %vm448_vm0, %v4047_v46  ;;  %v2150_v63 = vsel %vm2144_vm1, %v4719_v54, %v4720_v28 }
 0x3bd   : > { %v4220_v25 = vpack.c.bf16 %v2147_v29, %v2145_v30  ;;  %v4728_v61 = vpop.permute.xlu1 %4727  ;;  %v4723_v32 = vpop.permute.xlu0 %4722  ;;  %2049 = vmatprep.mubr.f32.mxu0 %v6458_v39 }
 0x3be   : > { %v4730_v58 = vunpack.i.h.bf16 %v4728_v61  ;;  %v4729_v1 = vunpack.i.l.bf16 %v4728_v61  ;;  %v4725_v62 = vunpack.i.h.bf16 %v4723_v32  ;;  %v4724_v41 = vunpack.i.l.bf16 %v4723_v32 }
 0x3c0   : > { %v2149_v51 = vsel %vm2144_vm1, %v4729_v1, %v4719_v54  ;;  %v2151_v55 = vsel %vm2144_vm1, %v4730_v58, %v4724_v41  ;;  %4056 = vmatmul.mubr.msk.f32.vlgmr.msra.gmra.mrb[4].mxu0 %vm448_vm0, %v4052_v56  ;;  %v2152_v21 = vsel %vm2144_vm1, %v4724_v41, %v4725_v62 }
 0x3c1   : > { %v4224_v0 = vpack.c.bf16 %v2151_v55, %v2149_v51  ;;  %4221 = vmatpush1.bf16.msra.mxu0 %v4220_v25  ;;  %2055 = vmatprep.mubr.f32.mxu0 %v6458_v39  ;;  %v4222_v31 = vpack.c.bf16 %v2152_v21, %v2150_v63 }
 0x3c3   : > { %4223 = vmatprep.subr.bf16.mxu0 %v4222_v31 }
 0x3c4   : > { %4057 = vmatmul.mubr.msk.f32.gmra.mrb[6].mxu0 %vm448_vm0, %v4053_v60 }
 0x3c5   : > { %4225 = vmatpush1.bf16.msra.mxu0 %v4224_v0  ;;  %2061 = vmatprep.mubr.f32.mxu0 %v6458_v39 }
 0x3c8   : > { %4058 = vmatmul.mubr.msk.f32.gmra.mrb[8].mxu0 %vm448_vm0, %v4054_v6 }
 0x3c9   : > { %2067 = vmatprep.mubr.f32.mxu0 %v6458_v39 }
 0x3cc   : > { %4059 = vmatmul.mubr.msk.f32.gmra.mrb[10].mxu0 %vm448_vm0, %v4055_v57 }
 0x3cd   : > { %2237 = vmatprep.mubr.f32.mxu0 %v6458_v39 }
 0x3ce   : > { %v2277_v12 = vpop.permute.xlu0 %2276  ;;  %v2282_v11 = vpop.permute.xlu1 %2281 }
 0x3d0   : > { %4064 = vmatmul.mubr.msk.f32.vlgmr.msra.gmra.mrb[4].mxu0 %vm448_vm0, %v4060_v59 }
 0x3d1   : > { %2243 = vmatprep.mubr.f32.mxu0 %v6458_v39 }
 0x3d2   : > { %v2287_v23 = vpop.permute.xlu0 %2286  ;;  %v2292_v50 = vpop.permute.xlu1 %2291 }
 0x3d4   : > { %4065 = vmatmul.mubr.msk.f32.gmra.mrb[6].mxu0 %vm448_vm0, %v4061_v8 }
 0x3d5   : > { %2249 = vmatprep.mubr.f32.mxu0 %v6458_v39 }
 0x3d8   : > { %4066 = vmatmul.mubr.msk.f32.gmra.mrb[8].mxu0 %vm448_vm0, %v4062_v15 }
 0x3d9   : > { %2255 = vmatprep.mubr.f32.mxu0 %v6458_v39 }
 0x3dc   : > { %4067 = vmatmul.mubr.msk.f32.gmra.mrb[10].mxu0 %vm448_vm0, %v4063_v19 }
 0x3dd   : > { %2519 = vmatprep.mubr.f32.mxu0 %v6458_v39 }
 0x4a3   : > { %v2239_v35 = vpop.f32.mrb[4].mxu0 }
 0x4a4   : > { %v2294_v20 = vadd.f32 %v2277_v12, %v2239_v35  ;;  %v2241_v37 = vpop.f32.mrb[5].mxu0 }
 0x4a5   : > { %v2295_v38 = vadd.f32 %v2277_v12, %v2241_v37 }
 0x4a6   : > { %v2302_v18 = vmax.f32 %v2294_v20, 0.0 }
 0x4a7   : > { %v2303_v13 = vmax.f32 %v2295_v38, 0.0  ;;  %v2245_v40 = vpop.f32.mrb[6].mxu0 }
 0x4a8   : > { %v2296_v42 = vadd.f32 %v2282_v11, %v2245_v40  ;;  %2318 = vrot.lane.b32.xlu0 %v2302_v18, %s5080_s29  ;;  %v2247_v44 = vpop.f32.mrb[7].mxu0 }
 0x4a9   : > { %v2297_v16 = vadd.f32 %v2282_v11, %v2247_v44  ;;  %2320 = vrot.lane.b32.xlu1 %v2303_v13, %s5080_s29 }
 0x4aa   : > { %v2304_v17 = vmax.f32 %v2296_v42, 0.0 }
 0x4ab   : > { %v2305_v24 = vmax.f32 %v2297_v16, 0.0  ;;  %v2251_v45 = vpop.f32.mrb[8].mxu0 }
 0x4ac   : > { %v2298_v22 = vadd.f32 %v2287_v23, %v2251_v45  ;;  %2322 = vrot.lane.b32.xlu0 %v2304_v17, %s5080_s29  ;;  %v2253_v46 = vpop.f32.mrb[9].mxu0 }
 0x4ad   : > { %v2299_v49 = vadd.f32 %v2287_v23, %v2253_v46  ;;  %2324 = vrot.lane.b32.xlu1 %v2305_v24, %s5080_s29 }
 0x4ae   : > { %v2306_v14 = vmax.f32 %v2298_v22, 0.0 }
 0x4af   : > { %v2307_v28 = vmax.f32 %v2299_v49, 0.0  ;;  %v2257_v54 = vpop.f32.mrb[10].mxu0 }
 0x4b0   : > { %v2300_v29 = vadd.f32 %v2292_v50, %v2257_v54  ;;  %2326 = vrot.lane.b32.xlu0 %v2306_v14, %s5080_s29  ;;  %v2259_v30 = vpop.f32.mrb[11].mxu0 }
 0x4b1   : > { %v2301_v25 = vadd.f32 %v2292_v50, %v2259_v30  ;;  %2328 = vrot.lane.b32.xlu1 %v2307_v28, %s5080_s29 }
 0x4b2   : > { %v2308_v61 = vmax.f32 %v2300_v29, 0.0 }
 0x4b3   : > { %v2309_v32 = vmax.f32 %v2301_v25, 0.0 }
 0x4b4   : > { %2330 = vrot.lane.b32.xlu0 %v2308_v61, %s5080_s29 }
 0x4b5   : > { %2332 = vrot.lane.b32.xlu1 %v2309_v32, %s5080_s29 }
 0x51a   : > { %v2319_v56 = vpop.permute.xlu0 %2318 }
 0x51b   : > { %2350 = vst.msk [vmem:[#allocation2] sm:$0xff] %vm704_vm4, %v2319_v56  ;;  %v2321_v58 = vpop.permute.xlu1 %2320 }
 0x51c   : > { %v5928_v1 = vsel %vm404_vm2, %v2319_v56, %v2321_v58  ;;  %2352 = vst.msk [vmem:[#allocation2 + $0x10] sm:$0xff] %vm404_vm2, %v2321_v58 }
 0x51d   : > { %v2646_v44 = vmul.f32 %v5928_v1, %v5411_v34  ;;  %v6008_v24 = vmul.f32 %v5928_v1, %v5700_v33  ;;  %v6012_v45 = vmul.f32 %v5928_v1, %v5333_v5 }
 0x51e   : > { %v2323_v62 = vpop.permute.xlu0 %2322 }
 0x51f   : > { %2353 = vst.msk [vmem:[#allocation2 + $0x18] sm:$0xff] %vm704_vm4, %v2323_v62  ;;  %v2325_v41 = vpop.permute.xlu1 %2324 }
 0x520   : > { %v5933_v51 = vsel %vm404_vm2, %v2323_v62, %v2325_v41  ;;  %2355 = vst.msk [vmem:[#allocation2 + $0x28] sm:$0xff] %vm404_vm2, %v2325_v41 }
 0x521   : > { %v2649_v17 = vmul.f32 %v5933_v51, %v5411_v34  ;;  %v6024_v49 = vmul.f32 %v5933_v51, %v5700_v33  ;;  %v6032_v54 = vmul.f32 %v5933_v51, %v5333_v5 }
 0x522   : > { %v2327_v55 = vpop.permute.xlu0 %2326  ;;  %v5949_v6 = vld [vmem:[#allocation2] sm:$0xff] }
 0x523   : > { %2356 = vst.msk [vmem:[#allocation2 + $0x30] sm:$0xff] %vm704_vm4, %v2327_v55  ;;  %v2329_v63 = vpop.permute.xlu1 %2328  ;;  %v5937_v21 = vld [vmem:[#allocation2 + $0x10] sm:$0xff]  ;;  %v2645_v22 = vmul.f32 %v5949_v6, %v5386_v26 }
 0x524   : > { %v5940_v0 = vsel %vm404_vm2, %v2327_v55, %v2329_v63  ;;  %2358 = vst.msk [vmem:[#allocation2 + $0x40] sm:$0xff] %vm404_vm2, %v2329_v63  ;;  %v5945_v60 = vpack.i.bf16 %v5937_v21, %v5928_v1  ;;  %v2647_v13 = vmul.f32 %v5937_v21, %v5388_v27  ;;  %v2825_v28 = vmul.f32 %v5937_v21, %v5439_v48 }
 0x525   : > { %v2652_v50 = vmul.f32 %v5940_v0, %v5411_v34  ;;  %v6054_v55 = vmul.f32 %v5940_v0, %v5700_v33  ;;  %v6062_v63 = vmul.f32 %v5949_v6, %v5676_v53 }
 0x526   : > { %v2331_v31 = vpop.permute.xlu0 %2330  ;;  %4732 = vrot.lane.b32.xlu0 %v5945_v60, %s5083_s20  ;;  %v5951_v57 = vld [vmem:[#allocation2 + $0x18] sm:$0xff]  ;;  %v4761_v14 = vpack.i.bf16 %v2647_v13, %v2646_v44 }
 0x527   : > { %2359 = vst.msk [vmem:[#allocation2 + $0x48] sm:$0xff] %vm704_vm4, %v2331_v31  ;;  %v2333_v59 = vpop.permute.xlu1 %2332  ;;  %v5956_v8 = vpack.i.bf16 %v5951_v57, %v5949_v6  ;;  %v5958_v15 = vld [vmem:[#allocation2 + $0x28] sm:$0xff]  ;;  %v2648_v16 = vmul.f32 %v5951_v57, %v5386_v26 }
 0x528   : > { %v5961_v19 = vsel %vm404_vm2, %v2331_v31, %v2333_v59  ;;  %2361 = vst.msk [vmem:[#allocation2 + $0x58] sm:$0xff] %vm404_vm2, %v2333_v59  ;;  %v5966_v12 = vpack.i.bf16 %v5958_v15, %v5933_v51  ;;  %v2650_v42 = vmul.f32 %v5958_v15, %v5388_v27  ;;  %v2828_v61 = vmul.f32 %v5958_v15, %v5439_v48 }
 0x529   : > { %v4771_v30 = vpack.i.bf16 %v2648_v16, %v2645_v22  ;;  %v2655_v56 = vmul.f32 %v5961_v19, %v5411_v34  ;;  %v6046_v41 = vmul.f32 %v5958_v15, %v5695_v2  ;;  %v6068_v31 = vmul.f32 %v5951_v57, %v5676_v53 }
 0x52a   : > { %4737 = vrot.lane.b32.xlu0 %v5956_v8, %s5083_s20  ;;  %4742 = vrot.lane.b32.xlu1 %v5966_v12, %s5083_s20  ;;  %v5980_v37 = vld [vmem:[#allocation2 + $0x30] sm:$0xff]  ;;  %v4766_v29 = vpack.i.bf16 %v2650_v42, %v2649_v17  ;;  %v6084_v16 = vmul.f32 %v5961_v19, %v5700_v33 }
 0x52b   : > { %v5972_v35 = vld [vmem:[#allocation2 + $0x40] sm:$0xff]  ;;  %v2651_v25 = vmul.f32 %v5980_v37, %v5386_v26  ;;  %v6072_v59 = vmul.f32 %v5980_v37, %v5676_v53 }
 0x52c   : > { %v5976_v20 = vpack.i.bf16 %v5972_v35, %v5940_v0  ;;  %v2653_v23 = vmul.f32 %v5972_v35, %v5388_v27  ;;  %v6058_v34 = vmul.f32 %v5972_v35, %v5695_v2  ;;  %v2831_v33 = vmul.f32 %v5972_v35, %v5439_v48 }
 0x52e   : > { %4747 = vrot.lane.b32.xlu1 %v5976_v20, %s5083_s20  ;;  %v5982_v38 = vld [vmem:[#allocation2 + $0x48] sm:$0xff]  ;;  %v4776_v32 = vpack.i.bf16 %v2653_v23, %v2652_v50  ;;  %v4956_v44 = vpack.i.bf16 %v6058_v34, %v6054_v55  ;;  %v6110_v50 = vmul.f32 %v5940_v0, %v5333_v5 }
 0x52f   : > { %v5986_v18 = vpack.i.bf16 %v5982_v38, %v5980_v37  ;;  %v5988_v11 = vld [vmem:[#allocation2 + $0x58] sm:$0xff]  ;;  %v2654_v46 = vmul.f32 %v5982_v38, %v5386_v26  ;;  %v6050_v26 = vmul.f32 %v5937_v21, %v5695_v2  ;;  %v6076_v13 = vmul.f32 %v5982_v38, %v5676_v53 }
 0x530   : > { %v5994_v40 = vpack.i.bf16 %v5988_v11, %v5961_v19  ;;  %v2656_v62 = vmul.f32 %v5988_v11, %v5388_v27  ;;  %v4946_v27 = vpack.i.bf16 %v6046_v41, %v6024_v49  ;;  %v6088_v17 = vmul.f32 %v5988_v11, %v5695_v2 }
 0x531   : > { %v4786_v58 = vpack.i.bf16 %v2654_v46, %v2651_v25  ;;  %v4941_v42 = vpack.i.bf16 %v6050_v26, %v6008_v24  ;;  %v4951_v53 = vpack.i.bf16 %v6068_v31, %v6062_v63  ;;  %v4966_v23 = vpack.i.bf16 %v6076_v13, %v6072_v59 }
 0x532   : > { %4757 = vrot.lane.b32.xlu1 %v5986_v18, %s5083_s20  ;;  %4752 = vrot.lane.b32.xlu0 %v5994_v40, %s5083_s20  ;;  %v4781_v46 = vpack.i.bf16 %v2656_v62, %v2655_v56  ;;  %v6102_v2 = vmul.f32 %v5949_v6, %v5330_v4  ;;  %v6122_v25 = vmul.f32 %v5982_v38, %v5330_v4 }
 0x533   : > { %v2826_v56 = vmul.f32 %v5951_v57, %v5437_v47 }
 0x536   : > { %4767 = vrot.lane.b32.xlu1 %v4766_v29, %s5085_s28  ;;  %4762 = vrot.lane.b32.xlu0 %v4761_v14, %s5085_s28  ;;  %v6106_v14 = vmul.f32 %v5951_v57, %v5330_v4  ;;  %v6114_v29 = vmul.f32 %v5961_v19, %v5333_v5  ;;  %v2827_v5 = vmul.f32 %v5933_v51, %v5449_v52 }
 0x538   : > { %v4796_v39 = vpack.i.bf16 %v2828_v61, %v2827_v5  ;;  %v2834_v61 = vmul.f32 %v5988_v11, %v5439_v48  ;;  %v3157_v48 = vmul.f32 %v5937_v21, %v5517_v9 }
 0x53a   : > { %4777 = vrot.lane.b32.xlu1 %v4776_v32, %s5085_s28  ;;  %4772 = vrot.lane.b32.xlu0 %v4771_v30, %s5085_s28  ;;  %v6118_v30 = vmul.f32 %v5980_v37, %v5330_v4  ;;  %v2824_v32 = vmul.f32 %v5928_v1, %v5449_v52 }
 0x53c   : > { %v4791_v22 = vpack.i.bf16 %v2825_v28, %v2824_v32  ;;  %v2832_v28 = vmul.f32 %v5982_v38, %v5437_v47 }
 0x53e   : > { %4787 = vrot.lane.b32.xlu1 %v4786_v58, %s5085_s28  ;;  %4782 = vrot.lane.b32.xlu0 %v4781_v46, %s5085_s28  ;;  %v2830_v58 = vmul.f32 %v5940_v0, %v5449_v52  ;;  %v2823_v46 = vmul.f32 %v5949_v6, %v5437_v47 }
 0x540   : > { %v4806_v62 = vpack.i.bf16 %v2831_v33, %v2830_v58  ;;  %v4801_v4 = vpack.i.bf16 %v2826_v56, %v2823_v46  ;;  %v3156_v33 = vmul.f32 %v5928_v1, %v5525_v36  ;;  %v3158_v58 = vmul.f32 %v5951_v57, %v5519_v10 }
 0x541   : > { %v3162_v46 = vmul.f32 %v5940_v0, %v5525_v36 }
 0x542   : > { %4797 = vrot.lane.b32.xlu1 %v4796_v39, %s5087_s14  ;;  %4792 = vrot.lane.b32.xlu0 %v4791_v22, %s5087_s14  ;;  %v2829_v39 = vmul.f32 %v5980_v37, %v5437_v47  ;;  %v2833_v22 = vmul.f32 %v5961_v19, %v5449_v52  ;;  %v3160_v47 = vmul.f32 %v5958_v15, %v5517_v9 }
 0x543   : > { %v3159_v52 = vmul.f32 %v5933_v51, %v5525_v36 }
 0x544   : > { %v4816_v32 = vpack.i.bf16 %v2832_v28, %v2829_v39  ;;  %v4811_v5 = vpack.i.bf16 %v2834_v61, %v2833_v22  ;;  %v3155_v28 = vmul.f32 %v5949_v6, %v5519_v10  ;;  %v3164_v22 = vmul.f32 %v5982_v38, %v5519_v10 }
 0x545   : > { %v4856_v56 = vpack.i.bf16 %v3160_v47, %v3159_v52  ;;  %v3165_v47 = vmul.f32 %v5961_v19, %v5525_v36 }
 0x546   : > { %4807 = vrot.lane.b32.xlu1 %v4806_v62, %s5087_s14  ;;  %4802 = vrot.lane.b32.xlu0 %v4801_v4, %s5087_s14  ;;  %v4851_v62 = vpack.i.bf16 %v3157_v48, %v3156_v33  ;;  %v3163_v4 = vmul.f32 %v5972_v35, %v5517_v9  ;;  %v4861_v39 = vpack.i.bf16 %v3158_v58, %v3155_v28 }
 0x547   : > { %v3338_v33 = vmul.f32 %v5958_v15, %v5579_v43  ;;  %v3336_v15 = vmul.f32 %v5951_v57, %v5566_v7  ;;  %v3339_v57 = vmul.f32 %v5980_v37, %v5566_v7 }
 0x548   : > { %v4866_v61 = vpack.i.bf16 %v3163_v4, %v3162_v46  ;;  %v3341_v4 = vmul.f32 %v5972_v35, %v5579_v43  ;;  %v3342_v46 = vmul.f32 %v5982_v38, %v5566_v7  ;;  %v3344_v35 = vmul.f32 %v5988_v11, %v5579_v43 }
 0x54a   : > { %4817 = vrot.lane.b32.xlu1 %v4816_v32, %s5087_s14  ;;  %4812 = vrot.lane.b32.xlu0 %v4811_v5, %s5087_s14  ;;  %v3166_v32 = vmul.f32 %v5988_v11, %v5517_v9  ;;  %v3161_v5 = vmul.f32 %v5980_v37, %v5519_v10  ;;  %v3337_v9 = vmul.f32 %v5933_v51, %v5585_v3 }
 0x54b   : > { %v3334_v10 = vmul.f32 %v5928_v1, %v5585_v3  ;;  %v3333_v51 = vmul.f32 %v5949_v6, %v5566_v7  ;;  %v4906_v28 = vpack.i.bf16 %v3342_v46, %v3339_v57  ;;  %v6468_v7 = vpack.i.bf16 %v6088_v17, %v6084_v16  ;;  %v2390_v46 = vld [vmem:[#allocation7 + $0x38] sm:$0xff] }
 0x54c   : > { %v4876_v48 = vpack.i.bf16 %v3164_v22, %v3161_v5  ;;  %v4871_v52 = vpack.i.bf16 %v3166_v32, %v3165_v47 }
 0x54d   : > { %v4891_v1 = vpack.i.bf16 %v3336_v15, %v3333_v51  ;;  %v6469_v15 = vpack.c.bf16 %v6032_v54, %v6012_v45 }
 0x54e   : > { %4827 = vrot.lane.b32.xlu1 %v5966_v12, %s5088_s18  ;;  %4822 = vrot.lane.b32.xlu0 %v5945_v60, %s5088_s18 }
 0x552   : > { %4837 = vrot.lane.b32.xlu1 %v5976_v20, %s5088_s18  ;;  %4832 = vrot.lane.b32.xlu0 %v5956_v8, %s5088_s18 }
 0x556   : > { %4847 = vrot.lane.b32.xlu1 %v5986_v18, %s5088_s18  ;;  %4842 = vrot.lane.b32.xlu0 %v5994_v40, %s5088_s18 }
 0x55a   : > { %4857 = vrot.lane.b32.xlu1 %v4856_v56, %s5090_s26  ;;  %4852 = vrot.lane.b32.xlu0 %v4851_v62, %s5090_s26  ;;  %v3335_v56 = vmul.f32 %v5937_v21, %v5579_v43  ;;  %v4886_v62 = vpack.i.bf16 %v3338_v33, %v3337_v9  ;;  %v3340_v21 = vmul.f32 %v5940_v0, %v5585_v3  ;;  %v3844_v43 = vld [vmem:[%s6454_s9 + $0x8] sm:$0xff] }
 0x55b   : > { %v3343_v0 = vmul.f32 %v5961_v19, %v5585_v3  ;;  %v3843_v3 = vld [vmem:[%s6454_s9] sm:$0xff] }
 0x55c   : > { %v4881_v36 = vpack.i.bf16 %v3335_v56, %v3334_v10  ;;  %v4896_v58 = vpack.i.bf16 %v3341_v4, %v3340_v21  ;;  %v2389_v10 = vld [vmem:[#allocation7 + $0x30] sm:$0xff] }
 0x55d   : > { %v4901_v6 = vpack.i.bf16 %v3344_v35, %v3343_v0  ;;  %v2388_v0 = vld [vmem:[#allocation7 + $0x28] sm:$0xff] }
 0x55e   : > { %4867 = vrot.lane.b32.xlu1 %v4866_v61, %s5090_s26  ;;  %4862 = vrot.lane.b32.xlu0 %v4861_v39, %s5090_s26 }
 0x562   : > { %4877 = vrot.lane.b32.xlu1 %v4876_v48, %s5090_s26  ;;  %4872 = vrot.lane.b32.xlu0 %v4871_v52, %s5090_s26 }
 0x566   : > { %4887 = vrot.lane.b32.xlu1 %v4886_v62, %s5091_s17  ;;  %4882 = vrot.lane.b32.xlu0 %v4881_v36, %s5091_s17  ;;  %v2387_v62 = vld [vmem:[#allocation7 + $0x20] sm:$0xff] }
 0x56a   : > { %4897 = vrot.lane.b32.xlu1 %v4896_v58, %s5091_s17  ;;  %4892 = vrot.lane.b32.xlu0 %v4891_v1, %s5091_s17  ;;  %v6470_v58 = vpack.c.bf16 %v6106_v14, %v6102_v2  ;;  %v6471_v1 = vmov 0.0  }
 0x56e   : > { %4907 = vrot.lane.b32.xlu1 %v4906_v28, %s5091_s17  ;;  %4902 = vrot.lane.b32.xlu0 %v4901_v6, %s5091_s17 }
 0x572   : > { %4917 = vrot.lane.b32.xlu1 %v5966_v12, %s5092_s30  ;;  %4912 = vrot.lane.b32.xlu0 %v5945_v60, %s5092_s30  ;;  %v3846_v60 = vld [vmem:[%s6454_s9 + $0x18] sm:$0xff] }
 0x576   : > { %4927 = vrot.lane.b32.xlu1 %v5976_v20, %s5092_s30  ;;  %4922 = vrot.lane.b32.xlu0 %v5956_v8, %s5092_s30  ;;  %v3845_v8 = vld [vmem:[%s6454_s9 + $0x10] sm:$0xff] }
 0x57a   : > { %4937 = vrot.lane.b32.xlu1 %v5986_v18, %s5092_s30  ;;  %4932 = vrot.lane.b32.xlu0 %v5994_v40, %s5092_s30 }
 0x57e   : > { %4947 = vrot.lane.b32.xlu1 %v4946_v27, %s5093_s25  ;;  %4942 = vrot.lane.b32.xlu0 %v4941_v42, %s5093_s25 }
 0x582   : > { %4957 = vrot.lane.b32.xlu1 %v4956_v44, %s5093_s25  ;;  %4952 = vrot.lane.b32.xlu0 %v4951_v53, %s5093_s25 }
 0x586   : > { %4967 = vrot.lane.b32.xlu1 %v4966_v23, %s5093_s25  ;;  %4962 = vrot.lane.b32.xlu0 %v6468_v7, %s5093_s25  ;;  %v6472_v7 = vpack.c.bf16 %v6114_v29, %v6110_v50  ;;  %v2378_v50 = vld [vmem:[#allocation7] sm:$0xff]  ;;  %s4107_s25 = sshll.u32 %s6475_s16, 6 }
 0x587   : > { %s6432_s12 = scalar_lea.vmem %s6455_s10, %s4107_s25 }
 0x58a   : > { %3854 = vperm.xlu1 %4490, %v3844_v43   ;;  %3849 = vperm.xlu0 %4489, %v3843_v3  }
 0x58e   : > { %3864 = vperm.xlu1 %4490, %v3846_v60   ;;  %3859 = vperm.xlu0 %4489, %v3845_v8  }
 0x598   : > { %v4733_v19 = vpop.permute.xlu0 %4732 }
 0x599   : > { %v4735_v12 = vunpack.i.h.bf16 %v4733_v19  ;;  %v4734_v20 = vunpack.i.l.bf16 %v4733_v19 }
 0x59b   : > { %v2428_v26 = vsel %vm793_vm7, %v4734_v20, %v4735_v12  ;;  %v6473_v12 = vpack.c.bf16 %v6122_v25, %v6118_v30 }
 0x59c   : > { %v4738_v37 = vpop.permute.xlu0 %4737  ;;  %v4743_v38 = vpop.permute.xlu1 %4742 }
 0x59d   : > { %v4740_v18 = vunpack.i.h.bf16 %v4738_v37  ;;  %v4739_v11 = vunpack.i.l.bf16 %v4738_v37  ;;  %v4745_v40 = vunpack.i.h.bf16 %v4743_v38  ;;  %v4744_v24 = vunpack.i.l.bf16 %v4743_v38 }
 0x59f   : > { %v2427_v49 = vsel %vm793_vm7, %v4739_v11, %v4734_v20  ;;  %v2429_v41 = vsel %vm793_vm7, %v4740_v18, %v4744_v24  ;;  %v2430_v55 = vsel %vm793_vm7, %v4744_v24, %v4745_v40 }
 0x5a0   : > { %v4228_v34 = vpack.c.bf16 %v2429_v41, %v2427_v49  ;;  %v4748_v63 = vpop.permute.xlu1 %4747  ;;  %v4226_v27 = vpack.c.bf16 %v2430_v55, %v2428_v26  ;;  %v2379_v26 = vld [vmem:[#allocation7 + $0x8] sm:$0xff] }
 0x5a1   : > { %v4750_v31 = vunpack.i.h.bf16 %v4748_v63  ;;  %v4749_v59 = vunpack.i.l.bf16 %v4748_v63 }
 0x5a2   : > { %4227 = vmatprep.subr.bf16.mxu0 %v4226_v27  ;;  %4298 = vmatprep.subr.bf16.mxu1 %v4226_v27 }
 0x5a3   : > { %4229 = vmatpush1.bf16.msra.mxu0 %v4228_v34  ;;  %4300 = vmatpush1.bf16.msra.mxu1 %v4228_v34  ;;  %v2432_v39 = vsel %vm793_vm7, %v4749_v59, %v4750_v31 }
 0x5a4   : > { %v4753_v13 = vpop.permute.xlu0 %4752  ;;  %v4758_v42 = vpop.permute.xlu1 %4757 }
 0x5a5   : > { %v4755_v44 = vunpack.i.h.bf16 %v4753_v13  ;;  %v4754_v16 = vunpack.i.l.bf16 %v4753_v13  ;;  %v4760_v17 = vunpack.i.h.bf16 %v4758_v42  ;;  %v4759_v53 = vunpack.i.l.bf16 %v4758_v42  ;;  %v2380_v13 = vld [vmem:[#allocation7 + $0x10] sm:$0xff] }
 0x5a7   : > { %v2433_v23 = vsel %vm793_vm7, %v4760_v17, %v4754_v16  ;;  %v2431_v61 = vsel %vm793_vm7, %v4759_v53, %v4749_v59  ;;  %v2434_v22 = vsel %vm793_vm7, %v4754_v16, %v4755_v44 }
 0x5a8   : > { %v4232_v32 = vpack.c.bf16 %v2433_v23, %v2431_v61  ;;  %v4763_v5 = vpop.permute.xlu0 %4762  ;;  %v4768_v47 = vpop.permute.xlu1 %4767  ;;  %v4230_v48 = vpack.c.bf16 %v2434_v22, %v2432_v39  ;;  %v2381_v61 = vld [vmem:[#allocation7 + $0x18] sm:$0xff] }
 0x5a9   : > { %v4765_v52 = vunpack.i.h.bf16 %v4763_v5  ;;  %v4764_v33 = vunpack.i.l.bf16 %v4763_v5  ;;  %v4770_v56 = vunpack.i.h.bf16 %v4768_v47  ;;  %v4769_v9 = vunpack.i.l.bf16 %v4768_v47 }
 0x5aa   : > { %4231 = vmatprep.subr.bf16.mxu0 %v4230_v48  ;;  %4299 = vmatprep.subr.bf16.mxu1 %v4230_v48 }
 0x5ab   : > { %4233 = vmatpush1.bf16.msra.mxu0 %v4232_v32  ;;  %4301 = vmatpush1.bf16.msra.mxu1 %v4232_v32  ;;  %v2699_v35 = vsel %vm1083_vm9, %v4764_v33, %v4765_v52  ;;  %v2701_v57 = vsel %vm1083_vm9, %v4769_v9, %v4770_v56 }
 0x5ac   : > { %v4773_v36 = vpop.permute.xlu0 %4772  ;;  %v4778_v4 = vpop.permute.xlu1 %4777  ;;  %4235 = vmatprep.subr.bf16.mxu1 %v6469_v15  ;;  %v4242_v19 = vpack.c.bf16 %v2701_v57, %v2699_v35 }
 0x5ad   : > { %v4775_v21 = vunpack.i.h.bf16 %v4773_v36  ;;  %v4774_v51 = vunpack.i.l.bf16 %v4773_v36  ;;  %v4780_v45 = vunpack.i.h.bf16 %v4778_v4  ;;  %v4779_v54 = vunpack.i.l.bf16 %v4778_v4  ;;  %v2658_v4 = vld [vmem:[#allocation7 + $0x40] sm:$0xff] }
 0x5ae   : > { %4070 = vmatmul.mubr.msk.f32.vlgmr.msra.gmra.mrb[8].mxu1 %vm448_vm0, %v2389_v10  ;;  %4068 = vmatmul.mubr.msk.f32.vlgmr.msra.gmra.mrb[12].mxu0 %vm448_vm0, %v2387_v62 }
 0x5af   : > { %4237 = vmatpush1.bf16.msra.mxu1 %v6470_v58  ;;  %2537 = vmatprep.mubr.f32.mxu1 %v6471_v1  ;;  %v2698_v2 = vsel %vm1083_vm9, %v4774_v51, %v4764_v33  ;;  %v2700_v14 = vsel %vm1083_vm9, %v4775_v21, %v4769_v9  ;;  %v2703_v18 = vsel %vm1083_vm9, %v4779_v54, %v4780_v45 }
 0x5b0   : > { %v4783_v28 = vpop.permute.xlu0 %4782  ;;  %v4788_v6 = vpop.permute.xlu1 %4787  ;;  %4239 = vmatprep.subr.bf16.mxu1 %v6472_v7  ;;  %2525 = vmatprep.mubr.f32.mxu0 %v6471_v1  ;;  %v4244_v20 = vpack.c.bf16 %v2700_v14, %v2698_v2  ;;  %v2660_v14 = vld [vmem:[#allocation7 + $0x50] sm:$0xff] }
 0x5b1   : > { %v4785_v43 = vunpack.i.h.bf16 %v4783_v28  ;;  %v4784_v3 = vunpack.i.l.bf16 %v4783_v28  ;;  %v4790_v60 = vunpack.i.h.bf16 %v4788_v6  ;;  %v4789_v8 = vunpack.i.l.bf16 %v4788_v6 }
 0x5b2   : > { %4071 = vmatmul.mubr.msk.f32.gmra.mrb[10].mxu1 %vm448_vm0, %v2390_v46  ;;  %4069 = vmatmul.mubr.msk.f32.gmra.mrb[14].mxu0 %vm448_vm0, %v2388_v0  ;;  %v2659_v0 = vld [vmem:[#allocation7 + $0x48] sm:$0xff] }
 0x5b3   : > { %4241 = vmatpush1.bf16.msra.mxu1 %v6473_v12  ;;  %2620 = vmatprep.mubr.f32.mxu1 %v6471_v1  ;;  %v2705_v29 = vsel %vm1083_vm9, %v4784_v3, %v4785_v43  ;;  %v2704_v41 = vsel %vm1083_vm9, %v4790_v60, %v4784_v3  ;;  %v2702_v30 = vsel %vm1083_vm9, %v4789_v8, %v4779_v54 }
 0x5b4   : > { %v4793_v37 = vpop.permute.xlu0 %4792  ;;  %v4798_v38 = vpop.permute.xlu1 %4797  ;;  %4243 = vmatprep.subr.bf16.mxu1 %v4242_v19  ;;  %v4246_v25 = vpack.c.bf16 %v2705_v29, %v2703_v18  ;;  %v4248_v31 = vpack.c.bf16 %v2704_v41, %v2702_v30 }
 0x5b5   : > { %v4795_v11 = vunpack.i.h.bf16 %v4793_v37  ;;  %v4794_v40 = vunpack.i.l.bf16 %v4793_v37  ;;  %v4800_v24 = vunpack.i.h.bf16 %v4798_v38  ;;  %v4799_v49 = vunpack.i.l.bf16 %v4798_v38 }
 0x5b6   : > { %4072 = vmatmul.mubr.msk.f32.vlgmr.msra.gmra.mrb[12].mxu1 %vm448_vm0, %v2378_v50  ;;  %v2661_v50 = vld [vmem:[#allocation7 + $0x58] sm:$0xff] }
 0x5b7   : > { %4245 = vmatpush1.bf16.msra.mxu1 %v4244_v20  ;;  %2626 = vmatprep.mubr.f32.mxu1 %v6471_v1  ;;  %v2877_v55 = vsel %vm1271_vm10, %v4794_v40, %v4795_v11  ;;  %v2879_v34 = vsel %vm1271_vm10, %v4799_v49, %v4800_v24 }
 0x5b8   : > { %v4803_v63 = vpop.permute.xlu0 %4802  ;;  %v4808_v27 = vpop.permute.xlu1 %4807  ;;  %4247 = vmatprep.subr.bf16.mxu1 %v4246_v25  ;;  %v4250_v59 = vpack.c.bf16 %v2879_v34, %v2877_v55  ;;  %v2836_v55 = vld [vmem:[#allocation7 + $0x60] sm:$0xff] }
 0x5b9   : > { %v4804_v16 = vunpack.i.l.bf16 %v4803_v63  ;;  %v4805_v17 = vunpack.i.h.bf16 %v4803_v63  ;;  %v4810_v5 = vunpack.i.h.bf16 %v4808_v27  ;;  %v4809_v47 = vunpack.i.l.bf16 %v4808_v27 }
 0x5ba   : > { %4073 = vmatmul.mubr.msk.f32.gmra.mrb[14].mxu1 %vm448_vm0, %v2379_v26 }
 0x5bb   : > { %4249 = vmatpush1.bf16.msra.mxu1 %v4248_v31  ;;  %2632 = vmatprep.mubr.f32.mxu1 %v6471_v1  ;;  %v2876_v32 = vsel %vm1271_vm10, %v4804_v16, %v4794_v40  ;;  %v2878_v48 = vsel %vm1271_vm10, %v4805_v17, %v4799_v49  ;;  %v2881_v58 = vsel %vm1271_vm10, %v4809_v47, %v4810_v5 }
 0x5bc   : > { %v4813_v42 = vpop.permute.xlu0 %4812  ;;  %v4818_v44 = vpop.permute.xlu1 %4817  ;;  %4251 = vmatprep.subr.bf16.mxu1 %v4250_v59  ;;  %v4252_v51 = vpack.c.bf16 %v2878_v48, %v2876_v32 }
 0x5bd   : > { %v4815_v53 = vunpack.i.h.bf16 %v4813_v42  ;;  %v4814_v23 = vunpack.i.l.bf16 %v4813_v42  ;;  %v4820_v52 = vunpack.i.h.bf16 %v4818_v44  ;;  %v4819_v33 = vunpack.i.l.bf16 %v4818_v44  ;;  %v2837_v44 = vld [vmem:[#allocation7 + $0x68] sm:$0xff] }
 0x5be   : > { %4074 = vmatmul.mubr.msk.f32.gmra.mrb[8].mxu1 %vm448_vm0, %v2380_v13 }
 0x5bf   : > { %2638 = vmatprep.mubr.f32.mxu1 %v6471_v1  ;;  %v2883_v56 = vsel %vm1271_vm10, %v4814_v23, %v4815_v53  ;;  %v2882_v46 = vsel %vm1271_vm10, %v4820_v52, %v4814_v23  ;;  %v2880_v35 = vsel %vm1271_vm10, %v4819_v33, %v4809_v47  ;;  %v2839_v52 = vld [vmem:[#allocation7 + $0x78] sm:$0xff] }
 0x5c0   : > { %v4823_v39 = vpop.permute.xlu0 %4822  ;;  %v4828_v22 = vpop.permute.xlu1 %4827  ;;  %v4254_v57 = vpack.c.bf16 %v2883_v56, %v2881_v58  ;;  %v4256_v7 = vpack.c.bf16 %v2882_v46, %v2880_v35 }
 0x5c1   : > { %v4825_v9 = vunpack.i.h.bf16 %v4823_v39  ;;  %v4824_v10 = vunpack.i.l.bf16 %v4823_v39  ;;  %v4830_v62 = vunpack.i.h.bf16 %v4828_v22  ;;  %v4829_v36 = vunpack.i.l.bf16 %v4828_v22 }
 0x5c2   : > { %4075 = vmatmul.mubr.msk.f32.gmra.mrb[10].mxu1 %vm448_vm0, %v2381_v61  ;;  %v2838_v61 = vld [vmem:[#allocation7 + $0x70] sm:$0xff] }
 0x5c3   : > { %2790 = vmatprep.mubr.f32.mxu1 %v6471_v1  ;;  %v3031_v45 = vsel %vm1426_vm11, %v4824_v10, %v4825_v9  ;;  %v3033_v54 = vsel %vm1426_vm11, %v4829_v36, %v4830_v62 }
 0x5c4   : > { %v4833_v15 = vpop.permute.xlu0 %4832  ;;  %v4838_v21 = vpop.permute.xlu1 %4837  ;;  %v4258_v2 = vpack.c.bf16 %v3033_v54, %v3031_v45 }
 0x5c5   : > { %v4834_v60 = vunpack.i.l.bf16 %v4833_v15  ;;  %v4835_v8 = vunpack.i.h.bf16 %v4833_v15  ;;  %v4840_v38 = vunpack.i.h.bf16 %v4838_v21  ;;  %v4839_v18 = vunpack.i.l.bf16 %v4838_v21 }
 0x5c6   : > { %4076 = vmatmul.mubr.msk.f32.vlgmr.msra.gmra.mrb[12].mxu1 %vm448_vm0, %v2658_v4 }
 0x5c7   : > { %4253 = vmatpush1.bf16.msra.mxu1 %v4252_v51  ;;  %2796 = vmatprep.mubr.f32.mxu1 %v6471_v1  ;;  %v3030_v37 = vsel %vm1426_vm11, %v4834_v60, %v4824_v10  ;;  %v3032_v11 = vsel %vm1426_vm11, %v4835_v8, %v4829_v36  ;;  %v3035_v63 = vsel %vm1426_vm11, %v4839_v18, %v4840_v38 }
 0x5c8   : > { %4255 = vmatprep.subr.bf16.mxu1 %v4254_v57  ;;  %v4843_v28 = vpop.permute.xlu0 %4842  ;;  %v4848_v6 = vpop.permute.xlu1 %4847  ;;  %v4260_v34 = vpack.c.bf16 %v3032_v11, %v3030_v37  ;;  %v3002_v57 = vld [vmem:[#allocation7 + $0x80] sm:$0xff] }
 0x5c9   : > { %v4845_v19 = vunpack.i.h.bf16 %v4843_v28  ;;  %v4844_v12 = vunpack.i.l.bf16 %v4843_v28  ;;  %v4850_v40 = vunpack.i.h.bf16 %v4848_v6  ;;  %v4849_v24 = vunpack.i.l.bf16 %v4848_v6 }
 0x5ca   : > { %4077 = vmatmul.mubr.msk.f32.gmra.mrb[14].mxu1 %vm448_vm0, %v2659_v0 }
 0x5cb   : > { %4257 = vmatpush1.bf16.msra.mxu1 %v4256_v7  ;;  %2802 = vmatprep.mubr.f32.mxu1 %v6471_v1  ;;  %v3037_v49 = vsel %vm1426_vm11, %v4844_v12, %v4845_v19  ;;  %v3036_v27 = vsel %vm1426_vm11, %v4850_v40, %v4844_v12  ;;  %v3034_v31 = vsel %vm1426_vm11, %v4849_v24, %v4839_v18  ;;  %v3003_v7 = vld [vmem:[#allocation7 + $0x88] sm:$0xff]  ;;  %v3004_v19 = vld [vmem:[#allocation7 + $0x90] sm:$0xff]  ;;  %v3005_v18 = vld [vmem:[#allocation7 + $0x98] sm:$0xff] }
 0x5cc   : > { %4259 = vmatprep.subr.bf16.mxu1 %v4258_v2  ;;  %v4853_v43 = vpop.permute.xlu0 %4852  ;;  %v4858_v3 = vpop.permute.xlu1 %4857  ;;  %v4262_v42 = vpack.c.bf16 %v3037_v49, %v3035_v63  ;;  %v4264_v53 = vpack.c.bf16 %v3036_v27, %v3034_v31  ;;  %v3168_v27 = vld [vmem:[#allocation7 + $0xa0] sm:$0xff] }
 0x5cd   : > { %v4855_v41 = vunpack.i.h.bf16 %v4853_v43  ;;  %v4854_v30 = vunpack.i.l.bf16 %v4853_v43  ;;  %v4860_v25 = vunpack.i.h.bf16 %v4858_v3  ;;  %v4859_v26 = vunpack.i.l.bf16 %v4858_v3 }
 0x5ce   : > { %4078 = vmatmul.mubr.msk.f32.gmra.mrb[8].mxu1 %vm448_vm0, %v2660_v14 }
 0x5cf   : > { %2808 = vmatprep.mubr.f32.mxu1 %v6471_v1  ;;  %v3209_v16 = vsel %vm1614_vm13, %v4854_v30, %v4855_v41  ;;  %v3211_v17 = vsel %vm1614_vm13, %v4859_v26, %v4860_v25 }
 0x5d0   : > { %v4863_v29 = vpop.permute.xlu0 %4862  ;;  %v6337_v20 = vpop.permute.xlu1 %4867  ;;  %v4266_v23 = vpack.c.bf16 %v3211_v17, %v3209_v16 }
 0x5d1   : > { %v4864_v32 = vunpack.i.l.bf16 %v4863_v29  ;;  %v4865_v5 = vunpack.i.h.bf16 %v4863_v29  ;;  %v4870_v56 = vunpack.i.h.bf16 %v6337_v20  ;;  %v4869_v9 = vunpack.i.l.bf16 %v6337_v20 }
 0x5d2   : > { %4079 = vmatmul.mubr.msk.f32.gmra.mrb[10].mxu1 %vm448_vm0, %v2661_v50 }
 0x5d3   : > { %2968 = vmatprep.mubr.f32.mxu1 %v6471_v1  ;;  %v3208_v33 = vsel %vm1614_vm13, %v4864_v32, %v4854_v30  ;;  %v3210_v10 = vsel %vm1614_vm13, %v4865_v5, %v4859_v26  ;;  %v3213_v45 = vsel %vm1614_vm13, %v4869_v9, %v4870_v56 }
 0x5d4   : > { %v4873_v59 = vpop.permute.xlu0 %4872  ;;  %v4878_v13 = vpop.permute.xlu1 %4877  ;;  %v4268_v0 = vpack.c.bf16 %v3210_v10, %v3208_v33 }
 0x5d5   : > { %v4875_v47 = vunpack.i.h.bf16 %v4873_v59  ;;  %v4874_v48 = vunpack.i.l.bf16 %v4873_v59  ;;  %v4880_v62 = vunpack.i.h.bf16 %v4878_v13  ;;  %v4879_v36 = vunpack.i.l.bf16 %v4878_v13 }
 0x5d6   : > { %4080 = vmatmul.mubr.msk.f32.vlgmr.msra.gmra.mrb[12].mxu1 %vm448_vm0, %v2836_v55 }
 0x5d7   : > { %4261 = vmatpush1.bf16.msra.mxu1 %v4260_v34  ;;  %2974 = vmatprep.mubr.f32.mxu1 %v6471_v1  ;;  %v3215_v21 = vsel %vm1614_vm13, %v4874_v48, %v4875_v47  ;;  %v3214_v54 = vsel %vm1614_vm13, %v4880_v62, %v4874_v48  ;;  %v3212_v28 = vsel %vm1614_vm13, %v4879_v36, %v4869_v9  ;;  %v3170_v47 = vld [vmem:[#allocation7 + $0xb0] sm:$0xff]  ;;  %v3171_v9 = vld [vmem:[#allocation7 + $0xb8] sm:$0xff] }
 0x5d8   : > { %4263 = vmatprep.subr.bf16.mxu1 %v4262_v42  ;;  %v4883_v39 = vpop.permute.xlu0 %4882  ;;  %v4888_v22 = vpop.permute.xlu1 %4887  ;;  %v4270_v6 = vpack.c.bf16 %v3215_v21, %v3213_v45  ;;  %v4272_v60 = vpack.c.bf16 %v3214_v54, %v3212_v28  ;;  %v3346_v54 = vld [vmem:[#allocation7 + $0xc0] sm:$0xff] }
 0x5d9   : > { %v4885_v51 = vunpack.i.h.bf16 %v4883_v39  ;;  %v4884_v58 = vunpack.i.l.bf16 %v4883_v39  ;;  %v4890_v46 = vunpack.i.h.bf16 %v4888_v22  ;;  %v4889_v35 = vunpack.i.l.bf16 %v4888_v22 }
 0x5da   : > { %4081 = vmatmul.mubr.msk.f32.gmra.mrb[14].mxu1 %vm448_vm0, %v2837_v44 }
 0x5db   : > { %4265 = vmatpush1.bf16.msra.mxu1 %v4264_v53  ;;  %2980 = vmatprep.mubr.f32.mxu1 %v6471_v1  ;;  %v3387_v2 = vsel %vm1801_vm14, %v4884_v58, %v4885_v51  ;;  %v3389_v14 = vsel %vm1801_vm14, %v4889_v35, %v4890_v46  ;;  %v3169_v53 = vld [vmem:[#allocation7 + $0xa8] sm:$0xff] }
 0x5dc   : > { %4267 = vmatprep.subr.bf16.mxu1 %v4266_v23  ;;  %v4893_v4 = vpop.permute.xlu0 %4892  ;;  %v4898_v15 = vpop.permute.xlu1 %4897  ;;  %v4274_v8 = vpack.c.bf16 %v3389_v14, %v3387_v2 }
 0x5dd   : > { %v4894_v12 = vunpack.i.l.bf16 %v4893_v4  ;;  %v4895_v50 = vunpack.i.h.bf16 %v4893_v4  ;;  %v4900_v40 = vunpack.i.h.bf16 %v4898_v15  ;;  %v4899_v24 = vunpack.i.l.bf16 %v4898_v15 }
 0x5de   : > { %4082 = vmatmul.mubr.msk.f32.gmra.mrb[8].mxu1 %vm448_vm0, %v2838_v61 }
 0x5df   : > { %2986 = vmatprep.mubr.f32.mxu1 %v6471_v1  ;;  %v3386_v11 = vsel %vm1801_vm14, %v4894_v12, %v4884_v58  ;;  %v3388_v49 = vsel %vm1801_vm14, %v4895_v50, %v4889_v35  ;;  %v3391_v42 = vsel %vm1801_vm14, %v4899_v24, %v4900_v40 }
 0x5e0   : > { %v4903_v43 = vpop.permute.xlu0 %4902  ;;  %v4908_v3 = vpop.permute.xlu1 %4907  ;;  %v4276_v13 = vpack.c.bf16 %v3388_v49, %v3386_v11 }
 0x5e1   : > { %v4905_v29 = vunpack.i.h.bf16 %v4903_v43  ;;  %v4904_v20 = vunpack.i.l.bf16 %v4903_v43  ;;  %v4910_v41 = vunpack.i.h.bf16 %v4908_v3  ;;  %v4909_v30 = vunpack.i.l.bf16 %v4908_v3  ;;  %v3347_v3 = vld [vmem:[#allocation7 + $0xc8] sm:$0xff] }
 0x5e2   : > { %4083 = vmatmul.mubr.msk.f32.gmra.mrb[10].mxu1 %vm448_vm0, %v2839_v52 }
 0x5e3   : > { %3122 = vmatprep.mubr.f32.mxu1 %v6471_v1  ;;  %v3393_v25 = vsel %vm1801_vm14, %v4904_v20, %v4905_v29  ;;  %v3392_v44 = vsel %vm1801_vm14, %v4910_v41, %v4904_v20  ;;  %v3390_v16 = vsel %vm1801_vm14, %v4909_v30, %v4899_v24  ;;  %v3348_v29 = vld [vmem:[#allocation7 + $0xd0] sm:$0xff]  ;;  %v3349_v24 = vld [vmem:[#allocation7 + $0xd8] sm:$0xff] }
 0x5e4   : > { %v4913_v37 = vpop.permute.xlu0 %4912  ;;  %v4918_v38 = vpop.permute.xlu1 %4917  ;;  %v4278_v17 = vpack.c.bf16 %v3393_v25, %v3391_v42  ;;  %v4280_v39 = vpack.c.bf16 %v3392_v44, %v3390_v16  ;;  %v3513_v44 = vld [vmem:[#allocation7 + $0xe8] sm:$0xff] }
 0x5e5   : > { %v4915_v26 = vunpack.i.h.bf16 %v4913_v37  ;;  %v4914_v55 = vunpack.i.l.bf16 %v4913_v37  ;;  %v4920_v34 = vunpack.i.h.bf16 %v4918_v38  ;;  %v4919_v63 = vunpack.i.l.bf16 %v4918_v38 }
 0x5e6   : > { %4084 = vmatmul.mubr.msk.f32.vlgmr.msra.gmra.mrb[12].mxu1 %vm448_vm0, %v3002_v57 }
 0x5e7   : > { %4269 = vmatpush1.bf16.msra.mxu1 %v4268_v0  ;;  %3128 = vmatprep.mubr.f32.mxu1 %v6471_v1  ;;  %v3541_v23 = vsel %vm1956_vm15, %v4914_v55, %v4915_v26  ;;  %v3543_v61 = vsel %vm1956_vm15, %v4919_v63, %v4920_v34  ;;  %v3512_v34 = vld [vmem:[#allocation7 + $0xe0] sm:$0xff] }
 0x5e8   : > { %4271 = vmatprep.subr.bf16.mxu1 %v4270_v6  ;;  %v4923_v31 = vpop.permute.xlu0 %4922  ;;  %v4928_v59 = vpop.permute.xlu1 %4927  ;;  %v4282_v5 = vpack.c.bf16 %v3543_v61, %v3541_v23  ;;  %v3678_v23 = vld [vmem:[#allocation7 + $0x100] sm:$0xff]  ;;  %v3679_v61 = vld [vmem:[#allocation7 + $0x108] sm:$0xff] }
 0x5e9   : > { %v4924_v48 = vunpack.i.l.bf16 %v4923_v31  ;;  %v4925_v52 = vunpack.i.h.bf16 %v4923_v31  ;;  %v4930_v4 = vunpack.i.h.bf16 %v4928_v59  ;;  %v4929_v15 = vunpack.i.l.bf16 %v4928_v59 }
 0x5ea   : > { %4085 = vmatmul.mubr.msk.f32.gmra.mrb[14].mxu1 %vm448_vm0, %v3003_v7 }
 0x5eb   : > { %4273 = vmatpush1.bf16.msra.mxu1 %v4272_v60  ;;  %3134 = vmatprep.mubr.f32.mxu1 %v6471_v1  ;;  %v3540_v36 = vsel %vm1956_vm15, %v4924_v48, %v4914_v55  ;;  %v3542_v21 = vsel %vm1956_vm15, %v4925_v52, %v4919_v63  ;;  %v3545_v6 = vsel %vm1956_vm15, %v4929_v15, %v4930_v4 }
 0x5ec   : > { %4275 = vmatprep.subr.bf16.mxu1 %v4274_v8  ;;  %v4933_v22 = vpop.permute.xlu0 %4932  ;;  %v4938_v32 = vpop.permute.xlu1 %4937  ;;  %v4284_v28 = vpack.c.bf16 %v3542_v21, %v3540_v36 }
 0x5ed   : > { %v4935_v33 = vunpack.i.h.bf16 %v4933_v22  ;;  %v4934_v56 = vunpack.i.l.bf16 %v4933_v22  ;;  %v4940_v51 = vunpack.i.h.bf16 %v4938_v32  ;;  %v4939_v58 = vunpack.i.l.bf16 %v4938_v32  ;;  %v3681_v22 = vld [vmem:[#allocation7 + $0x118] sm:$0xff] }
 0x5ee   : > { %4086 = vmatmul.mubr.msk.f32.gmra.mrb[8].mxu1 %vm448_vm0, %v3004_v19 }
 0x5ef   : > { %3140 = vmatprep.mubr.f32.mxu1 %v6471_v1  ;;  %v3547_v46 = vsel %vm1956_vm15, %v4934_v56, %v4935_v33  ;;  %v3546_v7 = vsel %vm1956_vm15, %v4940_v51, %v4934_v56  ;;  %v3544_v2 = vsel %vm1956_vm15, %v4939_v58, %v4929_v15 }
 0x5f0   : > { %v4943_v10 = vpop.permute.xlu0 %4942  ;;  %v4948_v62 = vpop.permute.xlu1 %4947  ;;  %v4286_v43 = vpack.c.bf16 %v3547_v46, %v3545_v6  ;;  %v4288_v19 = vpack.c.bf16 %v3546_v7, %v3544_v2 }
 0x5f1   : > { %v4945_v35 = vunpack.i.h.bf16 %v4943_v10  ;;  %v4944_v57 = vunpack.i.l.bf16 %v4943_v10  ;;  %v4950_v0 = vunpack.i.h.bf16 %v4948_v62  ;;  %v4949_v45 = vunpack.i.l.bf16 %v4948_v62 }
 0x5f2   : > { %4087 = vmatmul.mubr.msk.f32.gmra.mrb[10].mxu1 %vm448_vm0, %v3005_v18 }
 0x5f3   : > { %3300 = vmatprep.mubr.f32.mxu1 %v6471_v1  ;;  %v3719_v60 = vsel %vm2144_vm1, %v4944_v57, %v4945_v35  ;;  %v3721_v8 = vsel %vm2144_vm1, %v4949_v45, %v4950_v0 }
 0x5f4   : > { %v4953_v14 = vpop.permute.xlu0 %4952  ;;  %v4958_v12 = vpop.permute.xlu1 %4957  ;;  %v4290_v50 = vpack.c.bf16 %v3721_v8, %v3719_v60 }
 0x5f5   : > { %v4955_v37 = vunpack.i.h.bf16 %v4953_v14  ;;  %v4954_v38 = vunpack.i.l.bf16 %v4953_v14  ;;  %v4960_v49 = vunpack.i.h.bf16 %v4958_v12  ;;  %v4959_v41 = vunpack.i.l.bf16 %v4958_v12 }
 0x5f6   : > { %4088 = vmatmul.mubr.msk.f32.vlgmr.msra.gmra.mrb[12].mxu1 %vm448_vm0, %v3168_v27 }
 0x5f7   : > { %4277 = vmatpush1.bf16.msra.mxu1 %v4276_v13  ;;  %3306 = vmatprep.mubr.f32.mxu1 %v6471_v1  ;;  %v3718_v30 = vsel %vm2144_vm1, %v4954_v38, %v4944_v57  ;;  %v3720_v25 = vsel %vm2144_vm1, %v4955_v37, %v4949_v45  ;;  %v3723_v31 = vsel %vm2144_vm1, %v4959_v41, %v4960_v49 }
 0x5f8   : > { %4279 = vmatprep.subr.bf16.mxu1 %v4278_v17  ;;  %v4963_v20 = vpop.permute.xlu0 %4962  ;;  %v4968_v40 = vpop.permute.xlu1 %4967  ;;  %v4292_v27 = vpack.c.bf16 %v3720_v25, %v3718_v30  ;;  %v3514_v17 = vld [vmem:[#allocation7 + $0xf0] sm:$0xff] }
 0x5f9   : > { %v4965_v18 = vunpack.i.h.bf16 %v4963_v20  ;;  %v4964_v11 = vunpack.i.l.bf16 %v4963_v20  ;;  %v4970_v26 = vunpack.i.h.bf16 %v4968_v40  ;;  %v4969_v55 = vunpack.i.l.bf16 %v4968_v40 }
 0x5fa   : > { %4089 = vmatmul.mubr.msk.f32.gmra.mrb[14].mxu1 %vm448_vm0, %v3169_v53  ;;  %v3515_v53 = vld [vmem:[#allocation7 + $0xf8] sm:$0xff] }
 0x5fb   : > { %4281 = vmatpush1.bf16.msra.mxu1 %v4280_v39  ;;  %3312 = vmatprep.mubr.f32.mxu1 %v6471_v1  ;;  %v3725_v63 = vsel %vm2144_vm1, %v4964_v11, %v4965_v18  ;;  %v3724_v59 = vsel %vm2144_vm1, %v4970_v26, %v4964_v11  ;;  %v3722_v13 = vsel %vm2144_vm1, %v4969_v55, %v4959_v41  ;;  %v3680_v39 = vld [vmem:[#allocation7 + $0x110] sm:$0xff] }
 0x5fc   : > { %4283 = vmatprep.subr.bf16.mxu1 %v4282_v5  ;;  %v4294_v42 = vpack.c.bf16 %v3725_v63, %v3723_v31  ;;  %v4296_v16 = vpack.c.bf16 %v3724_v59, %v3722_v13 }
 0x5fe   : > { %4090 = vmatmul.mubr.msk.f32.gmra.mrb[8].mxu1 %vm448_vm0, %v3170_v47 }
 0x5ff   : > { %3318 = vmatprep.mubr.f32.mxu1 %v6471_v1 }
 0x602   : > { %4091 = vmatmul.mubr.msk.f32.gmra.mrb[10].mxu1 %vm448_vm0, %v3171_v9 }
 0x603   : > { %3478 = vmatprep.mubr.f32.mxu1 %v6471_v1 }
 0x606   : > { %4092 = vmatmul.mubr.msk.f32.vlgmr.msra.gmra.mrb[12].mxu1 %vm448_vm0, %v3346_v54 }
 0x607   : > { %4285 = vmatpush1.bf16.msra.mxu1 %v4284_v28  ;;  %3484 = vmatprep.mubr.f32.mxu1 %v6471_v1 }
 0x608   : > { %4287 = vmatprep.subr.bf16.mxu1 %v4286_v43 }
 0x609   : > { %v3850_v9 = vpop.permute.xlu0 %3849  ;;  %v3855_v51 = vpop.permute.xlu1 %3854 }
 0x60a   : > { %4093 = vmatmul.mubr.msk.f32.gmra.mrb[14].mxu1 %vm448_vm0, %v3347_v3 }
 0x60b   : > { %4289 = vmatpush1.bf16.msra.mxu1 %v4288_v19  ;;  %3490 = vmatprep.mubr.f32.mxu1 %v6471_v1 }
 0x60c   : > { %4291 = vmatprep.subr.bf16.mxu1 %v4290_v50 }
 0x60d   : > { %v3860_v57 = vpop.permute.xlu0 %3859  ;;  %v3865_v43 = vpop.permute.xlu1 %3864 }
 0x60e   : > { %4094 = vmatmul.mubr.msk.f32.gmra.mrb[8].mxu1 %vm448_vm0, %v3348_v29 }
 0x60f   : > { %3496 = vmatprep.mubr.f32.mxu1 %v6471_v1 }
 0x612   : > { %4095 = vmatmul.mubr.msk.f32.gmra.mrb[10].mxu1 %vm448_vm0, %v3349_v24 }
 0x613   : > { %3632 = vmatprep.mubr.f32.mxu1 %v6471_v1 }
 0x616   : > { %4096 = vmatmul.mubr.msk.f32.vlgmr.msra.gmra.mrb[12].mxu1 %vm448_vm0, %v3512_v34 }
 0x617   : > { %4293 = vmatpush1.bf16.msra.mxu1 %v4292_v27  ;;  %3638 = vmatprep.mubr.f32.mxu1 %v6471_v1 }
 0x618   : > { %4295 = vmatprep.subr.bf16.mxu1 %v4294_v42 }
 0x61a   : > { %4097 = vmatmul.mubr.msk.f32.gmra.mrb[14].mxu1 %vm448_vm0, %v3513_v44 }
 0x61b   : > { %4297 = vmatpush1.bf16.msra.mxu1 %v4296_v16  ;;  %3644 = vmatprep.mubr.f32.mxu1 %v6471_v1 }
 0x61e   : > { %4098 = vmatmul.mubr.msk.f32.gmra.mrb[8].mxu1 %vm448_vm0, %v3514_v17 }
 0x61f   : > { %3650 = vmatprep.mubr.f32.mxu1 %v6471_v1 }
 0x622   : > { %4099 = vmatmul.mubr.msk.f32.gmra.mrb[10].mxu1 %vm448_vm0, %v3515_v53 }
 0x623   : > { %3810 = vmatprep.mubr.f32.mxu1 %v6471_v1 }
 0x626   : > { %4100 = vmatmul.mubr.msk.f32.vlgmr.msra.gmra.mrb[12].mxu1 %vm448_vm0, %v3678_v23 }
 0x627   : > { %3816 = vmatprep.mubr.f32.mxu1 %v6471_v1 }
 0x62a   : > { %4101 = vmatmul.mubr.msk.f32.gmra.mrb[14].mxu1 %vm448_vm0, %v3679_v61 }
 0x62b   : > { %3822 = vmatprep.mubr.f32.mxu1 %v6471_v1 }
 0x62e   : > { %4102 = vmatmul.mubr.msk.f32.gmra.mrb[8].mxu1 %vm448_vm0, %v3680_v39 }
 0x62f   : > { %3828 = vmatprep.mubr.f32.mxu1 %v6471_v1 }
 0x632   : > { %4103 = vmatmul.mubr.msk.f32.gmra.mrb[10].mxu1 %vm448_vm0, %v3681_v22 }
 0x681   : > { %v2521_v32 = vpop.f32.mrb[12].mxu0 }
 0x682   : > { %v2523_v5 = vpop.f32.mrb[13].mxu0 }
 0x685   : > { %v2527_v47 = vpop.f32.mrb[14].mxu0 }
 0x686   : > { %v2529_v48 = vpop.f32.mrb[15].mxu0 }
 0x6f9   : > { %v3812_v52 = vpop.f32.mrb[12].mxu1 }
 0x6fa   : > { %v4302_v33 = vadd.f32 %v3812_v52, %v2521_v32  ;;  %v3814_v56 = vpop.f32.mrb[13].mxu1 }
 0x6fb   : > { %v4303_v10 = vadd.f32 %v3814_v56, %v2523_v5 }
 0x6fc   : > { %v3867_v62 = vadd.f32 %v4302_v33, %v3850_v9 }
 0x6fd   : > { %v3868_v1 = vadd.f32 %v4303_v10, %v3850_v9  ;;  %v3818_v36 = vpop.f32.mrb[14].mxu1 }
 0x6fe   : > { %v3875_v4 = vmax.f32 %v3867_v62, 0.0  ;;  %v4304_v15 = vadd.f32 %v3818_v36, %v2527_v47  ;;  %v3820_v21 = vpop.f32.mrb[15].mxu1 }
 0x6ff   : > { %v3876_v58 = vmax.f32 %v3868_v1, 0.0  ;;  %v4305_v46 = vadd.f32 %v3820_v21, %v2529_v48 }
 0x700   : > { %3883 = vst [vmem:[%s6432_s12] sm:$0xff] %v3875_v4  ;;  %v3869_v35 = vadd.f32 %v4304_v15, %v3855_v51 }
 0x701   : > { %3884 = vst [vmem:[%s6432_s12 + $0x8] sm:$0xff] %v3876_v58  ;;  %v3870_v0 = vadd.f32 %v4305_v46, %v3855_v51  ;;  %v3824_v45 = vpop.f32.mrb[8].mxu1 }
 0x702   : > { %v3877_v54 = vmax.f32 %v3869_v35, 0.0  ;;  %v3871_v28 = vadd.f32 %v3860_v57, %v3824_v45  ;;  %v3826_v6 = vpop.f32.mrb[9].mxu1 }
 0x703   : > { %v3878_v7 = vmax.f32 %v3870_v0, 0.0  ;;  %v3872_v2 = vadd.f32 %v3860_v57, %v3826_v6 }
 0x704   : > { %3885 = vst [vmem:[%s6432_s12 + $0x10] sm:$0xff] %v3877_v54  ;;  %v3879_v14 = vmax.f32 %v3871_v28, 0.0 }
 0x705   : > { %3886 = vst [vmem:[%s6432_s12 + $0x18] sm:$0xff] %v3878_v7  ;;  %v3880_v3 = vmax.f32 %v3872_v2, 0.0  ;;  %v3830_v60 = vpop.f32.mrb[10].mxu1 }
 0x706   : > { %3887 = vst [vmem:[%s6432_s12 + $0x20] sm:$0xff] %v3879_v14  ;;  %v3873_v8 = vadd.f32 %v3865_v43, %v3830_v60  ;;  %v3832_v19 = vpop.f32.mrb[11].mxu1 }
 0x707   : > { %3888 = vst [vmem:[%s6432_s12 + $0x28] sm:$0xff] %v3880_v3  ;;  %v3874_v12 = vadd.f32 %v3865_v43, %v3832_v19 }
 0x708   : > { %v3881_v50 = vmax.f32 %v3873_v8, 0.0 }
 0x709   : > { %v3882_v29 = vmax.f32 %v3874_v12, 0.0 }
 0x70a   : > { %3889 = vst [vmem:[%s6432_s12 + $0x30] sm:$0xff] %v3881_v50 }
 0x70b   : > { %3890 = vst [vmem:[%s6432_s12 + $0x38] sm:$0xff] %v3882_v29 }
 0x70c PF: > { %s22_s13 = sadd.s32 1, %s5069_s13  }
 0x70d   : > { %p19_p5 = scmp.ge.s32.totalorder %s22_s13, 4  }
 0x70f   :  { %21 = sbr.rel (!%p19_p5) target bundleno = 2 (0x2), region = 119 }
 0x716   :  { %3912 = vsyncpa [#allocation4], 1 }
 0x717   :  { %3914 = vsyncpa [#allocation4 + $0x1], 1 }
 0x718   :  { %3915 = vsyncpa [#allocation6], 1 }

</bundles_post_ra>
